<compile_context>
chip_gen: v5e
topology: v5e:2x2
jax: 0.10.0
libtpu: 0.0.40
codegen_flags: <defaults>
</compile_context>

<pallas_src>
import math

import jax
import jax.numpy as jnp
from jax.experimental import pallas as pl
from jax.experimental.pallas import tpu as pltpu

B, S, D, H, DFF, N_LAYERS = 2, 8, 32, 4, 64, 2
DK = D // H
DP = 128            # lane-padded model width (all activations lane-dense)
EPS = 1e-6          # LayerNorm eps (added to std, Annotated-Transformer style)
NEG = -1e9


def encoder_stack_kernel(mask_ref, x_ref, w_ref, vec_ref, o_ref):
    x = x_ref[0]                      # (S, DP); lanes >= D are always zero
    keep = mask_ref[0]                # (1, S) key-keep vector (1 = keep)
    # additive key bias, broadcast over (H, S_q, S_k)
    bias = jnp.where(keep > 0.0, 0.0, NEG).reshape(1, 1, S)
    # lane-validity mask for LayerNorm stats — computed once, reused everywhere
    valid = jax.lax.broadcasted_iota(jnp.int32, (S, DP), 1) < D

    def layernorm(h, g, b):
        # torch semantics: mean/std over last dim, unbiased (ddof=1), eps on std
        mean = jnp.sum(h, axis=-1, keepdims=True) * (1.0 / D)      # pads are zero
        diff = jnp.where(valid, h - mean, 0.0)
        var = jnp.sum(diff * diff, axis=-1, keepdims=True) * (1.0 / (D - 1))
        # exact reciprocal for LN (parity with fp32 reference); g/b zero-padded
        return g * (diff / (jnp.sqrt(var) + EPS)) + b

    def softmax_last(s):
        m = jnp.max(s, axis=-1, keepdims=True)
        e = jnp.exp(s - m)
        return e * pl.reciprocal(jnp.sum(e, axis=-1, keepdims=True), approx=True)

    for l in range(N_LAYERS):         # static unroll; weights resident in VMEM
        vecs = vec_ref[l]             # (8, DP): ln1g ln1b ln2g ln2b bqkv bo b1 b2

        # ---- sublayer 1: x + self_attn(norm(x))   (dropout == identity) ----
        h = layernorm(x, vecs[0:1], vecs[1:2])
        qkv = jnp.dot(h, w_ref[l, 0],
                      preferred_element_type=jnp.float32) + vecs[4:5]      # (S, DP)
        # split heads once, then batched contractions over the head axis
        q = jnp.transpose(qkv[:, 0 * D:1 * D].reshape(S, H, DK), (1, 0, 2))  # (H,S,DK)
        k = jnp.transpose(qkv[:, 1 * D:2 * D].reshape(S, H, DK), (1, 0, 2))
        v = jnp.transpose(qkv[:, 2 * D:3 * D].reshape(S, H, DK), (1, 0, 2))
        s = jnp.einsum('hqd,hkd->hqk', q, k,
                       preferred_element_type=jnp.float32)   # 1/sqrt(dk) folded in Wq
        p = softmax_last(s + bias)
        att = jnp.einsum('hqk,hkd->hqd', p, v, preferred_element_type=jnp.float32)
        att = jnp.transpose(att, (1, 0, 2)).reshape(S, D)                    # (S, D)
        att = jnp.dot(att, w_ref[l, 1, 0:D, :],
                      preferred_element_type=jnp.float32) + vecs[5:6]        # (S, DP)
        x = x + att

        # ---- sublayer 2: x + ffn(norm(x)) ----
        h2 = layernorm(x, vecs[2:3], vecs[3:4])
        f = jnp.dot(h2, w_ref[l, 2], preferred_element_type=jnp.float32) + vecs[6:7]
        f = jnp.maximum(f, 0.0)
        f = jnp.dot(f, w_ref[l, 3], preferred_element_type=jnp.float32) + vecs[7:8]
        x = x + f

    # ---- final AttnEncoder.norm ----
    fin = vec_ref[N_LAYERS]
    o_ref[0] = layernorm(x, fin[0:1], fin[1:2])       # lane-dense (S, DP) store


def attn_encoder(x, mask, w_slab, vec_slab):
    # forward: for layer in self.layers: x = layer(x, mask); return self.norm(x)
    xp = jnp.pad(x, ((0, 0), (0, 0), (0, DP - D)))            # lane-dense (B,S,DP)
    out = pl.pallas_call(
        encoder_stack_kernel,
        grid=(B,),
        in_specs=[
            pl.BlockSpec((1, 1, S), lambda b: (b, 0, 0)),                 # mask
            pl.BlockSpec((1, S, DP), lambda b: (b, 0, 0)),                # x
            pl.BlockSpec((N_LAYERS, 4, DP, DP), lambda b: (0, 0, 0, 0)),  # weights
            pl.BlockSpec((N_LAYERS + 1, 8, DP), lambda b: (0, 0, 0)),     # vectors
        ],
        out_specs=pl.BlockSpec((1, S, DP), lambda b: (b, 0, 0)),
        out_shape=jax.ShapeDtypeStruct((B, S, DP), jnp.float32),
        compiler_params=pltpu.CompilerParams(
            dimension_semantics=("parallel",)),       # shards batch across v7x TCs
    )(mask.astype(jnp.float32), xp, w_slab, vec_slab)
    return out[..., :D]


def init_params(key):
    # PyTorch nn.Linear computes y = x @ W.T + b; weights are stored here as
    # (in, out) so the kernel does y = x @ W + b (synthetic deterministic init).
    scale = 1.0 / math.sqrt(DK)
    w_blocks, vec_blocks = [], []
    for _ in range(N_LAYERS):
        key, k1, k2, k3, k4, k5, k6 = jax.random.split(key, 7)

        def w(k, shape):
            return 0.02 * jax.random.normal(k, shape, jnp.float32)

        wq, wk, wv = w(k1, (D, D)), w(k2, (D, D)), w(k3, (D, D))
        wo, w1, w2 = w(k4, (D, D)), w(k5, (D, DFF)), w(k6, (DFF, D))

        blk = jnp.zeros((4, DP, DP), jnp.float32)
        blk = blk.at[0, :D, 0 * D:1 * D].set(wq * scale)   # 1/sqrt(dk) folded in Wq
        blk = blk.at[0, :D, 1 * D:2 * D].set(wk)
        blk = blk.at[0, :D, 2 * D:3 * D].set(wv)
        blk = blk.at[1, :D, :D].set(wo)                    # output cols >= D stay 0
        blk = blk.at[2, :D, :DFF].set(w1)
        blk = blk.at[3, :DFF, :D].set(w2)
        w_blocks.append(blk)

        vec = jnp.zeros((8, DP), jnp.float32)
        vec = vec.at[0, :D].set(1.0)       # ln1 gamma
        vec = vec.at[2, :D].set(1.0)       # ln2 gamma
        # rows 1,3 = ln betas; 4 = bqkv; 5 = bo; 6 = b1; 7 = b2 (all zero init).
        # NOTE: if bqkv's q-part were nonzero it must also be pre-scaled by 1/sqrt(dk).
        vec_blocks.append(vec)

    fin = jnp.zeros((8, DP), jnp.float32).at[0, :D].set(1.0)   # final LN gamma/beta
    vec_blocks.append(fin)
    return jnp.stack(w_blocks), jnp.stack(vec_blocks)


if __name__ == "__main__":
    key = jax.random.PRNGKey(0)
    kx, kp = jax.random.split(key)
    x = jax.random.normal(kx, (B, S, D), jnp.float32)
    mask = jnp.ones((B, 1, S), jnp.float32)
    mask = mask.at[1, 0, 6:].set(0.0)   # mask the last two key positions of batch 1

    w_slab, vec_slab = init_params(kp)
    out = attn_encoder(x, mask, w_slab, vec_slab)
    jax.block_until_ready(out)
    assert out.shape == (B, S, D) and out.dtype == jnp.float32
    assert bool(jnp.all(jnp.isfinite(out)))
    print("KERNEL_OK")
</pallas_src>

<mosaic_0001>
module attributes {stable_mosaic.version = 11 : i64} {
  func.func @encoder_stack_kernel(%arg0: i32, %arg1: memref<1x1x8xf32, #tpu.memory_space<vmem>>, %arg2: memref<1x8x128xf32, #tpu.memory_space<vmem>>, %arg3: memref<2x4x128x128xf32, #tpu.memory_space<vmem>>, %arg4: memref<3x8x128xf32, #tpu.memory_space<vmem>>, %arg5: memref<1x8x128xf32, #tpu.memory_space<vmem>>) attributes {dimension_semantics = [#tpu.dimension_semantics<parallel>], iteration_bounds = array<i64: 2>, scalar_prefetch = 0 : i64, scratch_operands = 0 : i64, tpu.core_type = #tpu.core_type<tc>, window_params = [{transform_indices = @transform_0, window_bounds = array<i64: 1, 1, 8>}, {transform_indices = @transform_1, window_bounds = array<i64: 1, 8, 128>}, {pipeline_mode = #tpu.pipeline_mode<synchronous>, transform_indices = @transform_2, window_bounds = array<i64: 2, 4, 128, 128>}, {pipeline_mode = #tpu.pipeline_mode<synchronous>, transform_indices = @transform_3, window_bounds = array<i64: 3, 8, 128>}, {transform_indices = @transform_4, window_bounds = array<i64: 1, 8, 128>}]} {
    %c0 = arith.constant 0 : index
    %c0_0 = arith.constant 0 : index
    %c0_1 = arith.constant 0 : index
    %0 = vector.load %arg2[%c0, %c0_0, %c0_1] : memref<1x8x128xf32, #tpu.memory_space<vmem>>, vector<1x8x128xf32>
    %1 = vector.shape_cast %0 : vector<1x8x128xf32> to vector<8x128xf32>
    %c0_2 = arith.constant 0 : index
    %c0_3 = arith.constant 0 : index
    %c0_4 = arith.constant 0 : index
    %2 = vector.load %arg1[%c0_2, %c0_3, %c0_4] : memref<1x1x8xf32, #tpu.memory_space<vmem>>, vector<1x1x8xf32>
    %3 = vector.shape_cast %2 : vector<1x1x8xf32> to vector<1x8xf32>
    %cst = arith.constant 0.000000e+00 : f32
    %4 = vector.broadcast %cst : f32 to vector<1x8xf32>
    %5 = arith.cmpf ogt, %3, %4 : vector<1x8xf32>
    %cst_5 = arith.constant 0.000000e+00 : f32
    %cst_6 = arith.constant -1.000000e+09 : f32
    %6 = vector.broadcast %cst_5 : f32 to vector<1x8xf32>
    %7 = vector.broadcast %cst_6 : f32 to vector<1x8xf32>
    %8 = arith.select %5, %6, %7 : vector<1x8xi1>, vector<1x8xf32>
    %9 = vector.shape_cast %8 : vector<1x8xf32> to vector<1x1x8xf32>
    %10 = tpu.iota {dimensions = array<i32: 1>} : vector<8x128xi32>
    %c32_i32 = arith.constant 32 : i32
    %11 = vector.broadcast %c32_i32 : i32 to vector<8x128xi32>
    %12 = arith.cmpi slt, %10, %11 : vector<8x128xi32>
    %c0_7 = arith.constant 0 : index
    %c0_8 = arith.constant 0 : index
    %c0_9 = arith.constant 0 : index
    %13 = vector.load %arg4[%c0_7, %c0_8, %c0_9] : memref<3x8x128xf32, #tpu.memory_space<vmem>>, vector<1x8x128xf32>
    %14 = vector.shape_cast %13 : vector<1x8x128xf32> to vector<8x128xf32>
    %15 = vector.extract_strided_slice %14 {offsets = [0, 0], sizes = [1, 128], strides = [1, 1]} : vector<8x128xf32> to vector<1x128xf32>
    %16 = vector.extract_strided_slice %14 {offsets = [1, 0], sizes = [1, 128], strides = [1, 1]} : vector<8x128xf32> to vector<1x128xf32>
    %cst_10 = arith.constant dense<0.000000e+00> : vector<8xf32>
    %17 = vector.multi_reduction <add>, %1, %cst_10 [1] : vector<8x128xf32> to vector<8xf32>
    %18 = vector.shape_cast %17 : vector<8xf32> to vector<8x1xf32>
    %cst_11 = arith.constant 3.125000e-02 : f32
    %19 = vector.broadcast %cst_11 : f32 to vector<8x1xf32>
    %20 = arith.mulf %18, %19 : vector<8x1xf32>
    %21 = vector.broadcast %20 : vector<8x1xf32> to vector<8x128xf32>
    %22 = arith.subf %1, %21 : vector<8x128xf32>
    %cst_12 = arith.constant 0.000000e+00 : f32
    %23 = vector.broadcast %cst_12 : f32 to vector<8x128xf32>
    %24 = arith.select %12, %22, %23 : vector<8x128xi1>, vector<8x128xf32>
    %25 = arith.mulf %24, %24 : vector<8x128xf32>
    %cst_13 = arith.constant dense<0.000000e+00> : vector<8xf32>
    %26 = vector.multi_reduction <add>, %25, %cst_13 [1] : vector<8x128xf32> to vector<8xf32>
    %27 = vector.shape_cast %26 : vector<8xf32> to vector<8x1xf32>
    %cst_14 = arith.constant 0.0322580636 : f32
    %28 = vector.broadcast %cst_14 : f32 to vector<8x1xf32>
    %29 = arith.mulf %27, %28 : vector<8x1xf32>
    %30 = math.sqrt %29 : vector<8x1xf32>
    %cst_15 = arith.constant 9.99999997E-7 : f32
    %31 = vector.broadcast %cst_15 : f32 to vector<8x1xf32>
    %32 = arith.addf %30, %31 : vector<8x1xf32>
    %33 = vector.broadcast %32 : vector<8x1xf32> to vector<8x128xf32>
    %34 = arith.divf %24, %33 : vector<8x128xf32>
    %35 = vector.broadcast %15 : vector<1x128xf32> to vector<8x128xf32>
    %36 = arith.mulf %35, %34 : vector<8x128xf32>
    %37 = vector.broadcast %16 : vector<1x128xf32> to vector<8x128xf32>
    %38 = arith.addf %36, %37 : vector<8x128xf32>
    %c0_16 = arith.constant 0 : index
    %c0_17 = arith.constant 0 : index
    %c0_18 = arith.constant 0 : index
    %c0_19 = arith.constant 0 : index
    %39 = vector.load %arg3[%c0_16, %c0_17, %c0_18, %c0_19] : memref<2x4x128x128xf32, #tpu.memory_space<vmem>>, vector<1x1x128x128xf32>
    %40 = vector.shape_cast %39 : vector<1x1x128x128xf32> to vector<128x128xf32>
    %cst_20 = arith.constant dense<0.000000e+00> : vector<8x128xf32>
    %41 = tpu.matmul %38, %40, %cst_20 {dimension_numbers = #tpu.dot_dimension_numbers<[1], [0], [0], [1], [0, 0, 1, 1], [], []>} : vector<8x128xf32>, vector<128x128xf32>, vector<8x128xf32> -> vector<8x128xf32>
    %42 = vector.extract_strided_slice %14 {offsets = [4, 0], sizes = [1, 128], strides = [1, 1]} : vector<8x128xf32> to vector<1x128xf32>
    %43 = vector.broadcast %42 : vector<1x128xf32> to vector<8x128xf32>
    %44 = arith.addf %41, %43 : vector<8x128xf32>
    %45 = vector.extract_strided_slice %44 {offsets = [0, 0], sizes = [8, 32], strides = [1, 1]} : vector<8x128xf32> to vector<8x32xf32>
    %46 = vector.shape_cast %45 : vector<8x32xf32> to vector<8x4x8xf32>
    %47 = tpu.transpose %46, [1, 0, 2] : vector<8x4x8xf32> -> vector<4x8x8xf32>
    %48 = vector.extract_strided_slice %44 {offsets = [0, 32], sizes = [8, 32], strides = [1, 1]} : vector<8x128xf32> to vector<8x32xf32>
    %49 = vector.shape_cast %48 : vector<8x32xf32> to vector<8x4x8xf32>
    %50 = tpu.transpose %49, [1, 0, 2] : vector<8x4x8xf32> -> vector<4x8x8xf32>
    %51 = vector.extract_strided_slice %44 {offsets = [0, 64], sizes = [8, 32], strides = [1, 1]} : vector<8x128xf32> to vector<8x32xf32>
    %52 = vector.shape_cast %51 : vector<8x32xf32> to vector<8x4x8xf32>
    %53 = tpu.transpose %52, [1, 0, 2] : vector<8x4x8xf32> -> vector<4x8x8xf32>
    "tpu.trace_start"() <{level = 10 : i32, message = "hqd,hkd->hqk"}> : () -> ()
    %cst_21 = arith.constant dense<0.000000e+00> : vector<4x8x8xf32>
    %54 = tpu.matmul %47, %50, %cst_21 {dimension_numbers = #tpu.dot_dimension_numbers<[2], [2], [1], [1], [0, 0, 0, 1, 1, 1], [0], [0]>} : vector<4x8x8xf32>, vector<4x8x8xf32>, vector<4x8x8xf32> -> vector<4x8x8xf32>
    "tpu.trace_stop"() : () -> ()
    %55 = vector.broadcast %9 : vector<1x1x8xf32> to vector<4x8x8xf32>
    %56 = arith.addf %54, %55 : vector<4x8x8xf32>
    %cst_22 = arith.constant dense<0xFF800000> : vector<4x8xf32>
    %57 = vector.multi_reduction <maximumf>, %56, %cst_22 [2] : vector<4x8x8xf32> to vector<4x8xf32>
    %58 = vector.shape_cast %57 : vector<4x8xf32> to vector<4x8x1xf32>
    %59 = vector.broadcast %58 : vector<4x8x1xf32> to vector<4x8x8xf32>
    %60 = arith.subf %56, %59 : vector<4x8x8xf32>
    %61 = math.exp %60 : vector<4x8x8xf32>
    %cst_23 = arith.constant dense<0.000000e+00> : vector<4x8xf32>
    %62 = vector.multi_reduction <add>, %61, %cst_23 [2] : vector<4x8x8xf32> to vector<4x8xf32>
    %63 = vector.shape_cast %62 : vector<4x8xf32> to vector<4x8x1xf32>
    %64 = tpu.reciprocal %63 {approx = true} : vector<4x8x1xf32> -> vector<4x8x1xf32>
    %65 = vector.broadcast %64 : vector<4x8x1xf32> to vector<4x8x8xf32>
    %66 = arith.mulf %61, %65 : vector<4x8x8xf32>
    "tpu.trace_start"() <{level = 10 : i32, message = "hqk,hkd->hqd"}> : () -> ()
    %cst_24 = arith.constant dense<0.000000e+00> : vector<4x8x8xf32>
    %67 = tpu.matmul %66, %53, %cst_24 {dimension_numbers = #tpu.dot_dimension_numbers<[2], [1], [1], [2], [0, 0, 0, 1, 1, 2], [0], [0]>} : vector<4x8x8xf32>, vector<4x8x8xf32>, vector<4x8x8xf32> -> vector<4x8x8xf32>
    "tpu.trace_stop"() : () -> ()
    %68 = tpu.transpose %67, [1, 0, 2] : vector<4x8x8xf32> -> vector<8x4x8xf32>
    %69 = vector.shape_cast %68 : vector<8x4x8xf32> to vector<8x32xf32>
    %c0_25 = arith.constant 0 : index
    %c1 = arith.constant 1 : index
    %c0_26 = arith.constant 0 : index
    %c0_27 = arith.constant 0 : index
    %70 = vector.load %arg3[%c0_25, %c1, %c0_26, %c0_27] : memref<2x4x128x128xf32, #tpu.memory_space<vmem>>, vector<1x1x32x128xf32>
    %71 = vector.shape_cast %70 : vector<1x1x32x128xf32> to vector<32x128xf32>
    %cst_28 = arith.constant dense<0.000000e+00> : vector<8x128xf32>
    %72 = tpu.matmul %69, %71, %cst_28 {dimension_numbers = #tpu.dot_dimension_numbers<[1], [0], [0], [1], [0, 0, 1, 1], [], []>} : vector<8x32xf32>, vector<32x128xf32>, vector<8x128xf32> -> vector<8x128xf32>
    %73 = vector.extract_strided_slice %14 {offsets = [5, 0], sizes = [1, 128], strides = [1, 1]} : vector<8x128xf32> to vector<1x128xf32>
    %74 = vector.broadcast %73 : vector<1x128xf32> to vector<8x128xf32>
    %75 = arith.addf %72, %74 : vector<8x128xf32>
    %76 = arith.addf %1, %75 : vector<8x128xf32>
    %77 = vector.extract_strided_slice %14 {offsets = [2, 0], sizes = [1, 128], strides = [1, 1]} : vector<8x128xf32> to vector<1x128xf32>
    %78 = vector.extract_strided_slice %14 {offsets = [3, 0], sizes = [1, 128], strides = [1, 1]} : vector<8x128xf32> to vector<1x128xf32>
    %cst_29 = arith.constant dense<0.000000e+00> : vector<8xf32>
    %79 = vector.multi_reduction <add>, %76, %cst_29 [1] : vector<8x128xf32> to vector<8xf32>
    %80 = vector.shape_cast %79 : vector<8xf32> to vector<8x1xf32>
    %cst_30 = arith.constant 3.125000e-02 : f32
    %81 = vector.broadcast %cst_30 : f32 to vector<8x1xf32>
    %82 = arith.mulf %80, %81 : vector<8x1xf32>
    %83 = vector.broadcast %82 : vector<8x1xf32> to vector<8x128xf32>
    %84 = arith.subf %76, %83 : vector<8x128xf32>
    %cst_31 = arith.constant 0.000000e+00 : f32
    %85 = vector.broadcast %cst_31 : f32 to vector<8x128xf32>
    %86 = arith.select %12, %84, %85 : vector<8x128xi1>, vector<8x128xf32>
    %87 = arith.mulf %86, %86 : vector<8x128xf32>
    %cst_32 = arith.constant dense<0.000000e+00> : vector<8xf32>
    %88 = vector.multi_reduction <add>, %87, %cst_32 [1] : vector<8x128xf32> to vector<8xf32>
    %89 = vector.shape_cast %88 : vector<8xf32> to vector<8x1xf32>
    %cst_33 = arith.constant 0.0322580636 : f32
    %90 = vector.broadcast %cst_33 : f32 to vector<8x1xf32>
    %91 = arith.mulf %89, %90 : vector<8x1xf32>
    %92 = math.sqrt %91 : vector<8x1xf32>
    %cst_34 = arith.constant 9.99999997E-7 : f32
    %93 = vector.broadcast %cst_34 : f32 to vector<8x1xf32>
    %94 = arith.addf %92, %93 : vector<8x1xf32>
    %95 = vector.broadcast %94 : vector<8x1xf32> to vector<8x128xf32>
    %96 = arith.divf %86, %95 : vector<8x128xf32>
    %97 = vector.broadcast %77 : vector<1x128xf32> to vector<8x128xf32>
    %98 = arith.mulf %97, %96 : vector<8x128xf32>
    %99 = vector.broadcast %78 : vector<1x128xf32> to vector<8x128xf32>
    %100 = arith.addf %98, %99 : vector<8x128xf32>
    %c0_35 = arith.constant 0 : index
    %c2 = arith.constant 2 : index
    %c0_36 = arith.constant 0 : index
    %c0_37 = arith.constant 0 : index
    %101 = vector.load %arg3[%c0_35, %c2, %c0_36, %c0_37] : memref<2x4x128x128xf32, #tpu.memory_space<vmem>>, vector<1x1x128x128xf32>
    %102 = vector.shape_cast %101 : vector<1x1x128x128xf32> to vector<128x128xf32>
    %cst_38 = arith.constant dense<0.000000e+00> : vector<8x128xf32>
    %103 = tpu.matmul %100, %102, %cst_38 {dimension_numbers = #tpu.dot_dimension_numbers<[1], [0], [0], [1], [0, 0, 1, 1], [], []>} : vector<8x128xf32>, vector<128x128xf32>, vector<8x128xf32> -> vector<8x128xf32>
    %104 = vector.extract_strided_slice %14 {offsets = [6, 0], sizes = [1, 128], strides = [1, 1]} : vector<8x128xf32> to vector<1x128xf32>
    %105 = vector.broadcast %104 : vector<1x128xf32> to vector<8x128xf32>
    %106 = arith.addf %103, %105 : vector<8x128xf32>
    %cst_39 = arith.constant 0.000000e+00 : f32
    %107 = vector.broadcast %cst_39 : f32 to vector<8x128xf32>
    %108 = arith.maximumf %106, %107 : vector<8x128xf32>
    %c0_40 = arith.constant 0 : index
    %c3 = arith.constant 3 : index
    %c0_41 = arith.constant 0 : index
    %c0_42 = arith.constant 0 : index
    %109 = vector.load %arg3[%c0_40, %c3, %c0_41, %c0_42] : memref<2x4x128x128xf32, #tpu.memory_space<vmem>>, vector<1x1x128x128xf32>
    %110 = vector.shape_cast %109 : vector<1x1x128x128xf32> to vector<128x128xf32>
    %cst_43 = arith.constant dense<0.000000e+00> : vector<8x128xf32>
    %111 = tpu.matmul %108, %110, %cst_43 {dimension_numbers = #tpu.dot_dimension_numbers<[1], [0], [0], [1], [0, 0, 1, 1], [], []>} : vector<8x128xf32>, vector<128x128xf32>, vector<8x128xf32> -> vector<8x128xf32>
    %112 = vector.extract_strided_slice %14 {offsets = [7, 0], sizes = [1, 128], strides = [1, 1]} : vector<8x128xf32> to vector<1x128xf32>
    %113 = vector.broadcast %112 : vector<1x128xf32> to vector<8x128xf32>
    %114 = arith.addf %111, %113 : vector<8x128xf32>
    %115 = arith.addf %76, %114 : vector<8x128xf32>
    %c1_44 = arith.constant 1 : index
    %c0_45 = arith.constant 0 : index
    %c0_46 = arith.constant 0 : index
    %116 = vector.load %arg4[%c1_44, %c0_45, %c0_46] : memref<3x8x128xf32, #tpu.memory_space<vmem>>, vector<1x8x128xf32>
    %117 = vector.shape_cast %116 : vector<1x8x128xf32> to vector<8x128xf32>
    %118 = vector.extract_strided_slice %117 {offsets = [0, 0], sizes = [1, 128], strides = [1, 1]} : vector<8x128xf32> to vector<1x128xf32>
    %119 = vector.extract_strided_slice %117 {offsets = [1, 0], sizes = [1, 128], strides = [1, 1]} : vector<8x128xf32> to vector<1x128xf32>
    %cst_47 = arith.constant dense<0.000000e+00> : vector<8xf32>
    %120 = vector.multi_reduction <add>, %115, %cst_47 [1] : vector<8x128xf32> to vector<8xf32>
    %121 = vector.shape_cast %120 : vector<8xf32> to vector<8x1xf32>
    %cst_48 = arith.constant 3.125000e-02 : f32
    %122 = vector.broadcast %cst_48 : f32 to vector<8x1xf32>
    %123 = arith.mulf %121, %122 : vector<8x1xf32>
    %124 = vector.broadcast %123 : vector<8x1xf32> to vector<8x128xf32>
    %125 = arith.subf %115, %124 : vector<8x128xf32>
    %cst_49 = arith.constant 0.000000e+00 : f32
    %126 = vector.broadcast %cst_49 : f32 to vector<8x128xf32>
    %127 = arith.select %12, %125, %126 : vector<8x128xi1>, vector<8x128xf32>
    %128 = arith.mulf %127, %127 : vector<8x128xf32>
    %cst_50 = arith.constant dense<0.000000e+00> : vector<8xf32>
    %129 = vector.multi_reduction <add>, %128, %cst_50 [1] : vector<8x128xf32> to vector<8xf32>
    %130 = vector.shape_cast %129 : vector<8xf32> to vector<8x1xf32>
    %cst_51 = arith.constant 0.0322580636 : f32
    %131 = vector.broadcast %cst_51 : f32 to vector<8x1xf32>
    %132 = arith.mulf %130, %131 : vector<8x1xf32>
    %133 = math.sqrt %132 : vector<8x1xf32>
    %cst_52 = arith.constant 9.99999997E-7 : f32
    %134 = vector.broadcast %cst_52 : f32 to vector<8x1xf32>
    %135 = arith.addf %133, %134 : vector<8x1xf32>
    %136 = vector.broadcast %135 : vector<8x1xf32> to vector<8x128xf32>
    %137 = arith.divf %127, %136 : vector<8x128xf32>
    %138 = vector.broadcast %118 : vector<1x128xf32> to vector<8x128xf32>
    %139 = arith.mulf %138, %137 : vector<8x128xf32>
    %140 = vector.broadcast %119 : vector<1x128xf32> to vector<8x128xf32>
    %141 = arith.addf %139, %140 : vector<8x128xf32>
    %c1_53 = arith.constant 1 : index
    %c0_54 = arith.constant 0 : index
    %c0_55 = arith.constant 0 : index
    %c0_56 = arith.constant 0 : index
    %142 = vector.load %arg3[%c1_53, %c0_54, %c0_55, %c0_56] : memref<2x4x128x128xf32, #tpu.memory_space<vmem>>, vector<1x1x128x128xf32>
    %143 = vector.shape_cast %142 : vector<1x1x128x128xf32> to vector<128x128xf32>
    %cst_57 = arith.constant dense<0.000000e+00> : vector<8x128xf32>
    %144 = tpu.matmul %141, %143, %cst_57 {dimension_numbers = #tpu.dot_dimension_numbers<[1], [0], [0], [1], [0, 0, 1, 1], [], []>} : vector<8x128xf32>, vector<128x128xf32>, vector<8x128xf32> -> vector<8x128xf32>
    %145 = vector.extract_strided_slice %117 {offsets = [4, 0], sizes = [1, 128], strides = [1, 1]} : vector<8x128xf32> to vector<1x128xf32>
    %146 = vector.broadcast %145 : vector<1x128xf32> to vector<8x128xf32>
    %147 = arith.addf %144, %146 : vector<8x128xf32>
    %148 = vector.extract_strided_slice %147 {offsets = [0, 0], sizes = [8, 32], strides = [1, 1]} : vector<8x128xf32> to vector<8x32xf32>
    %149 = vector.shape_cast %148 : vector<8x32xf32> to vector<8x4x8xf32>
    %150 = tpu.transpose %149, [1, 0, 2] : vector<8x4x8xf32> -> vector<4x8x8xf32>
    %151 = vector.extract_strided_slice %147 {offsets = [0, 32], sizes = [8, 32], strides = [1, 1]} : vector<8x128xf32> to vector<8x32xf32>
    %152 = vector.shape_cast %151 : vector<8x32xf32> to vector<8x4x8xf32>
    %153 = tpu.transpose %152, [1, 0, 2] : vector<8x4x8xf32> -> vector<4x8x8xf32>
    %154 = vector.extract_strided_slice %147 {offsets = [0, 64], sizes = [8, 32], strides = [1, 1]} : vector<8x128xf32> to vector<8x32xf32>
    %155 = vector.shape_cast %154 : vector<8x32xf32> to vector<8x4x8xf32>
    %156 = tpu.transpose %155, [1, 0, 2] : vector<8x4x8xf32> -> vector<4x8x8xf32>
    "tpu.trace_start"() <{level = 10 : i32, message = "hqd,hkd->hqk"}> : () -> ()
    %cst_58 = arith.constant dense<0.000000e+00> : vector<4x8x8xf32>
    %157 = tpu.matmul %150, %153, %cst_58 {dimension_numbers = #tpu.dot_dimension_numbers<[2], [2], [1], [1], [0, 0, 0, 1, 1, 1], [0], [0]>} : vector<4x8x8xf32>, vector<4x8x8xf32>, vector<4x8x8xf32> -> vector<4x8x8xf32>
    "tpu.trace_stop"() : () -> ()
    %158 = vector.broadcast %9 : vector<1x1x8xf32> to vector<4x8x8xf32>
    %159 = arith.addf %157, %158 : vector<4x8x8xf32>
    %cst_59 = arith.constant dense<0xFF800000> : vector<4x8xf32>
    %160 = vector.multi_reduction <maximumf>, %159, %cst_59 [2] : vector<4x8x8xf32> to vector<4x8xf32>
    %161 = vector.shape_cast %160 : vector<4x8xf32> to vector<4x8x1xf32>
    %162 = vector.broadcast %161 : vector<4x8x1xf32> to vector<4x8x8xf32>
    %163 = arith.subf %159, %162 : vector<4x8x8xf32>
    %164 = math.exp %163 : vector<4x8x8xf32>
    %cst_60 = arith.constant dense<0.000000e+00> : vector<4x8xf32>
    %165 = vector.multi_reduction <add>, %164, %cst_60 [2] : vector<4x8x8xf32> to vector<4x8xf32>
    %166 = vector.shape_cast %165 : vector<4x8xf32> to vector<4x8x1xf32>
    %167 = tpu.reciprocal %166 {approx = true} : vector<4x8x1xf32> -> vector<4x8x1xf32>
    %168 = vector.broadcast %167 : vector<4x8x1xf32> to vector<4x8x8xf32>
    %169 = arith.mulf %164, %168 : vector<4x8x8xf32>
    "tpu.trace_start"() <{level = 10 : i32, message = "hqk,hkd->hqd"}> : () -> ()
    %cst_61 = arith.constant dense<0.000000e+00> : vector<4x8x8xf32>
    %170 = tpu.matmul %169, %156, %cst_61 {dimension_numbers = #tpu.dot_dimension_numbers<[2], [1], [1], [2], [0, 0, 0, 1, 1, 2], [0], [0]>} : vector<4x8x8xf32>, vector<4x8x8xf32>, vector<4x8x8xf32> -> vector<4x8x8xf32>
    "tpu.trace_stop"() : () -> ()
    %171 = tpu.transpose %170, [1, 0, 2] : vector<4x8x8xf32> -> vector<8x4x8xf32>
    %172 = vector.shape_cast %171 : vector<8x4x8xf32> to vector<8x32xf32>
    %c1_62 = arith.constant 1 : index
    %c1_63 = arith.constant 1 : index
    %c0_64 = arith.constant 0 : index
    %c0_65 = arith.constant 0 : index
    %173 = vector.load %arg3[%c1_62, %c1_63, %c0_64, %c0_65] : memref<2x4x128x128xf32, #tpu.memory_space<vmem>>, vector<1x1x32x128xf32>
    %174 = vector.shape_cast %173 : vector<1x1x32x128xf32> to vector<32x128xf32>
    %cst_66 = arith.constant dense<0.000000e+00> : vector<8x128xf32>
    %175 = tpu.matmul %172, %174, %cst_66 {dimension_numbers = #tpu.dot_dimension_numbers<[1], [0], [0], [1], [0, 0, 1, 1], [], []>} : vector<8x32xf32>, vector<32x128xf32>, vector<8x128xf32> -> vector<8x128xf32>
    %176 = vector.extract_strided_slice %117 {offsets = [5, 0], sizes = [1, 128], strides = [1, 1]} : vector<8x128xf32> to vector<1x128xf32>
    %177 = vector.broadcast %176 : vector<1x128xf32> to vector<8x128xf32>
    %178 = arith.addf %175, %177 : vector<8x128xf32>
    %179 = arith.addf %115, %178 : vector<8x128xf32>
    %180 = vector.extract_strided_slice %117 {offsets = [2, 0], sizes = [1, 128], strides = [1, 1]} : vector<8x128xf32> to vector<1x128xf32>
    %181 = vector.extract_strided_slice %117 {offsets = [3, 0], sizes = [1, 128], strides = [1, 1]} : vector<8x128xf32> to vector<1x128xf32>
    %cst_67 = arith.constant dense<0.000000e+00> : vector<8xf32>
    %182 = vector.multi_reduction <add>, %179, %cst_67 [1] : vector<8x128xf32> to vector<8xf32>
    %183 = vector.shape_cast %182 : vector<8xf32> to vector<8x1xf32>
    %cst_68 = arith.constant 3.125000e-02 : f32
    %184 = vector.broadcast %cst_68 : f32 to vector<8x1xf32>
    %185 = arith.mulf %183, %184 : vector<8x1xf32>
    %186 = vector.broadcast %185 : vector<8x1xf32> to vector<8x128xf32>
    %187 = arith.subf %179, %186 : vector<8x128xf32>
    %cst_69 = arith.constant 0.000000e+00 : f32
    %188 = vector.broadcast %cst_69 : f32 to vector<8x128xf32>
    %189 = arith.select %12, %187, %188 : vector<8x128xi1>, vector<8x128xf32>
    %190 = arith.mulf %189, %189 : vector<8x128xf32>
    %cst_70 = arith.constant dense<0.000000e+00> : vector<8xf32>
    %191 = vector.multi_reduction <add>, %190, %cst_70 [1] : vector<8x128xf32> to vector<8xf32>
    %192 = vector.shape_cast %191 : vector<8xf32> to vector<8x1xf32>
    %cst_71 = arith.constant 0.0322580636 : f32
    %193 = vector.broadcast %cst_71 : f32 to vector<8x1xf32>
    %194 = arith.mulf %192, %193 : vector<8x1xf32>
    %195 = math.sqrt %194 : vector<8x1xf32>
    %cst_72 = arith.constant 9.99999997E-7 : f32
    %196 = vector.broadcast %cst_72 : f32 to vector<8x1xf32>
    %197 = arith.addf %195, %196 : vector<8x1xf32>
    %198 = vector.broadcast %197 : vector<8x1xf32> to vector<8x128xf32>
    %199 = arith.divf %189, %198 : vector<8x128xf32>
    %200 = vector.broadcast %180 : vector<1x128xf32> to vector<8x128xf32>
    %201 = arith.mulf %200, %199 : vector<8x128xf32>
    %202 = vector.broadcast %181 : vector<1x128xf32> to vector<8x128xf32>
    %203 = arith.addf %201, %202 : vector<8x128xf32>
    %c1_73 = arith.constant 1 : index
    %c2_74 = arith.constant 2 : index
    %c0_75 = arith.constant 0 : index
    %c0_76 = arith.constant 0 : index
    %204 = vector.load %arg3[%c1_73, %c2_74, %c0_75, %c0_76] : memref<2x4x128x128xf32, #tpu.memory_space<vmem>>, vector<1x1x128x128xf32>
    %205 = vector.shape_cast %204 : vector<1x1x128x128xf32> to vector<128x128xf32>
    %cst_77 = arith.constant dense<0.000000e+00> : vector<8x128xf32>
    %206 = tpu.matmul %203, %205, %cst_77 {dimension_numbers = #tpu.dot_dimension_numbers<[1], [0], [0], [1], [0, 0, 1, 1], [], []>} : vector<8x128xf32>, vector<128x128xf32>, vector<8x128xf32> -> vector<8x128xf32>
    %207 = vector.extract_strided_slice %117 {offsets = [6, 0], sizes = [1, 128], strides = [1, 1]} : vector<8x128xf32> to vector<1x128xf32>
    %208 = vector.broadcast %207 : vector<1x128xf32> to vector<8x128xf32>
    %209 = arith.addf %206, %208 : vector<8x128xf32>
    %cst_78 = arith.constant 0.000000e+00 : f32
    %210 = vector.broadcast %cst_78 : f32 to vector<8x128xf32>
    %211 = arith.maximumf %209, %210 : vector<8x128xf32>
    %c1_79 = arith.constant 1 : index
    %c3_80 = arith.constant 3 : index
    %c0_81 = arith.constant 0 : index
    %c0_82 = arith.constant 0 : index
    %212 = vector.load %arg3[%c1_79, %c3_80, %c0_81, %c0_82] : memref<2x4x128x128xf32, #tpu.memory_space<vmem>>, vector<1x1x128x128xf32>
    %213 = vector.shape_cast %212 : vector<1x1x128x128xf32> to vector<128x128xf32>
    %cst_83 = arith.constant dense<0.000000e+00> : vector<8x128xf32>
    %214 = tpu.matmul %211, %213, %cst_83 {dimension_numbers = #tpu.dot_dimension_numbers<[1], [0], [0], [1], [0, 0, 1, 1], [], []>} : vector<8x128xf32>, vector<128x128xf32>, vector<8x128xf32> -> vector<8x128xf32>
    %215 = vector.extract_strided_slice %117 {offsets = [7, 0], sizes = [1, 128], strides = [1, 1]} : vector<8x128xf32> to vector<1x128xf32>
    %216 = vector.broadcast %215 : vector<1x128xf32> to vector<8x128xf32>
    %217 = arith.addf %214, %216 : vector<8x128xf32>
    %218 = arith.addf %179, %217 : vector<8x128xf32>
    %c2_84 = arith.constant 2 : index
    %c0_85 = arith.constant 0 : index
    %c0_86 = arith.constant 0 : index
    %219 = vector.load %arg4[%c2_84, %c0_85, %c0_86] : memref<3x8x128xf32, #tpu.memory_space<vmem>>, vector<1x8x128xf32>
    %220 = vector.shape_cast %219 : vector<1x8x128xf32> to vector<8x128xf32>
    %221 = vector.extract_strided_slice %220 {offsets = [0, 0], sizes = [1, 128], strides = [1, 1]} : vector<8x128xf32> to vector<1x128xf32>
    %222 = vector.extract_strided_slice %220 {offsets = [1, 0], sizes = [1, 128], strides = [1, 1]} : vector<8x128xf32> to vector<1x128xf32>
    %cst_87 = arith.constant dense<0.000000e+00> : vector<8xf32>
    %223 = vector.multi_reduction <add>, %218, %cst_87 [1] : vector<8x128xf32> to vector<8xf32>
    %224 = vector.shape_cast %223 : vector<8xf32> to vector<8x1xf32>
    %cst_88 = arith.constant 3.125000e-02 : f32
    %225 = vector.broadcast %cst_88 : f32 to vector<8x1xf32>
    %226 = arith.mulf %224, %225 : vector<8x1xf32>
    %227 = vector.broadcast %226 : vector<8x1xf32> to vector<8x128xf32>
    %228 = arith.subf %218, %227 : vector<8x128xf32>
    %cst_89 = arith.constant 0.000000e+00 : f32
    %229 = vector.broadcast %cst_89 : f32 to vector<8x128xf32>
    %230 = arith.select %12, %228, %229 : vector<8x128xi1>, vector<8x128xf32>
    %231 = arith.mulf %230, %230 : vector<8x128xf32>
    %cst_90 = arith.constant dense<0.000000e+00> : vector<8xf32>
    %232 = vector.multi_reduction <add>, %231, %cst_90 [1] : vector<8x128xf32> to vector<8xf32>
    %233 = vector.shape_cast %232 : vector<8xf32> to vector<8x1xf32>
    %cst_91 = arith.constant 0.0322580636 : f32
    %234 = vector.broadcast %cst_91 : f32 to vector<8x1xf32>
    %235 = arith.mulf %233, %234 : vector<8x1xf32>
    %236 = math.sqrt %235 : vector<8x1xf32>
    %cst_92 = arith.constant 9.99999997E-7 : f32
    %237 = vector.broadcast %cst_92 : f32 to vector<8x1xf32>
    %238 = arith.addf %236, %237 : vector<8x1xf32>
    %239 = vector.broadcast %238 : vector<8x1xf32> to vector<8x128xf32>
    %240 = arith.divf %230, %239 : vector<8x128xf32>
    %241 = vector.broadcast %221 : vector<1x128xf32> to vector<8x128xf32>
    %242 = arith.mulf %241, %240 : vector<8x128xf32>
    %243 = vector.broadcast %222 : vector<1x128xf32> to vector<8x128xf32>
    %244 = arith.addf %242, %243 : vector<8x128xf32>
    %c0_93 = arith.constant 0 : index
    %c0_94 = arith.constant 0 : index
    %c0_95 = arith.constant 0 : index
    %245 = vector.load %arg5[%c0_93, %c0_94, %c0_95] : memref<1x8x128xf32, #tpu.memory_space<vmem>>, vector<1x8x128xf32>
    %246 = vector.shape_cast %245 : vector<1x8x128xf32> to vector<8x128xf32>
    %247 = vector.shape_cast %244 : vector<8x128xf32> to vector<1x8x128xf32>
    tpu.vector_store %arg5[%c0_93, %c0_94, %c0_95], %247 {strides = array<i32>} : memref<1x8x128xf32, #tpu.memory_space<vmem>>, vector<1x8x128xf32>,
    return
  }
  func.func @transform_0(%arg0: i32) -> (i32, i32, i32) {
    %c0_i32 = arith.constant 0 : i32
    %c0_i32_0 = arith.constant 0 : i32
    %c0_i32_1 = arith.constant 0 : i32
    return %arg0, %c0_i32, %c0_i32_0 : i32, i32, i32
  }
  func.func @transform_1(%arg0: i32) -> (i32, i32, i32) {
    %c0_i32 = arith.constant 0 : i32
    %c0_i32_0 = arith.constant 0 : i32
    %c0_i32_1 = arith.constant 0 : i32
    return %arg0, %c0_i32, %c0_i32_0 : i32, i32, i32
  }
  func.func @transform_2(%arg0: i32) -> (i32, i32, i32, i32) {
    %c0_i32 = arith.constant 0 : i32
    %c0_i32_0 = arith.constant 0 : i32
    %c0_i32_1 = arith.constant 0 : i32
    %c0_i32_2 = arith.constant 0 : i32
    %c0_i32_3 = arith.constant 0 : i32
    return %c0_i32, %c0_i32_0, %c0_i32_1, %c0_i32_2 : i32, i32, i32, i32
  }
  func.func @transform_3(%arg0: i32) -> (i32, i32, i32) {
    %c0_i32 = arith.constant 0 : i32
    %c0_i32_0 = arith.constant 0 : i32
    %c0_i32_1 = arith.constant 0 : i32
    %c0_i32_2 = arith.constant 0 : i32
    return %c0_i32, %c0_i32_0, %c0_i32_1 : i32, i32, i32
  }
  func.func @transform_4(%arg0: i32) -> (i32, i32, i32) {
    %c0_i32 = arith.constant 0 : i32
    %c0_i32_0 = arith.constant 0 : i32
    %c0_i32_1 = arith.constant 0 : i32
    return %arg0, %c0_i32, %c0_i32_0 : i32, i32, i32
  }
}

</mosaic_0001>

<bundles_post_ra>
// kernel: tpu_custom_call.1
= control target key start
LH: loop header
LB: loop body
LE: loop exit
PB: predicated region body
PF: predicated region fallthrough
CT: control target
= control target key end

     0   :  { %s3573_s0 = inlined_call_operand.hbm [shape: f32[2,1,8], index: 0, kind: input, shape index: {}]   ;;  %s3574_s1 = inlined_call_operand.hbm [shape: f32[2,8,128], index: 1, kind: input, shape index: {}]   ;;  %s3575_s2 = inlined_call_operand.hbm [shape: f32[2,4,128,128], index: 2, kind: input, shape index: {}]   ;;  %s3576_s3 = inlined_call_operand.hbm [shape: f32[3,8,128], index: 3, kind: input, shape index: {}]   ;;  %s3577_s4 = inlined_call_operand.hbm [shape: f32[2,8,128], index: 4, kind: output, shape index: {}]  }
   0x1   :  { %3578 = sst [smem:[#allocation17_spill]] %s3575_s2 }
   0x2   :  { %3579 = sst [smem:[#allocation18_spill]] %s3576_s3 }
   0x3   :  { %9 = vsyncpa [#allocation3], 0 }
   0x4   :  { %11 = vsyncpa [#allocation3 + $0x1], 0 }
   0x5   :  { %12 = vsyncpa [#allocation6], 0 }
   0x6   :  { %14 = vsyncpa [#allocation6 + $0x1], 0 }
   0x7   :  { %15 = vsyncpa [#allocation9], 0 }
   0x8   :  { %16 = vsyncpa [#allocation4], 0 }
   0x9   :  { %18 = vsyncpa [#allocation4 + $0x1], 0  ;;  %s2822_s15 = smov 0   ;;  %s2824_s16 = smov 0  }
   0xa   :  { %s2826_s17 = smov 0   ;;  %s2828_s18 = smov 0  }
   0xb LB: > { %s3580_s2 = sld [smem:[#allocation17_spill]]  ;;  %s2846_s22 = sadd.s32 4294967295, %s2780_s18   ;;  %s2780_s18 = sphi %s2828_s18, %s3594_s18   ;;  %s2776_s17 = sphi %s2826_s17, %s3593_s17   ;;  %s2772_s16 = sphi %s2824_s16, %s3592_s16   ;;  %s2768_s15 = sphi %s2822_s15, %s3591_s15  }
   0xc   : > { %p2383_p0 = scmp.ge.s32.totalorder %s2780_s18, 1  ;;  %p45_p1 = scmp.eq.s32.totalorder %s2846_s22, 0 }
   0xd   : > { %p149_p2 = scmp.lt.s32.totalorder %s2780_s18, 3  ;;  %s2782_s24 = smov [#allocation7]  }
   0xe   : > { %s162_s25 = sshll.u32 %s2782_s24, 4  ;;  %s3582_s3 = sld [smem:[#allocation18_spill]]  ;;  %s163_s25 = int_to_ptr.vmem [resolvable:$true] %s162_s25 }
   0xf   : > { %p2851_p3 = pnand %p2383_p0, %p149_p2  ;;  %s2783_s29 = smov [#allocation8]  }
  0x10   : > { %s176_s30 = sshll.u32 %s2783_s29, 4  ;;  %s2784_s5 = smov 128   ;;  %s177_s30 = int_to_ptr.vmem [resolvable:$true] %s176_s30 }
  0x11   : > { %s160_s21 = sshll.u32 %s3580_s2, 4  ;;  %p2438_p4 = pneg %p2851_p3  ;;  %s161_s21 = int_to_ptr.hbm [resolvable:$true] %s160_s21 }
  0x12   : > { %s2785_s6 = smov 8   ;;  %s2382_s7 = sadd.s32 4294967294, %s2780_s18  }
  0x13   : > { %p2439_p6 = pnand %p2438_p4, %p45_p1  ;;  %s2865_s8 = sadd.s32 1, %s2780_s18  }
  0x14   : > { %s174_s28 = sshll.u32 %s3582_s3, 4  ;;  %s28_s9 = ssub.s32 %s2780_s18, %s2865_s8  ;;  %s175_s28 = int_to_ptr.hbm [resolvable:$true] %s174_s28 }
  0x15   : > { %2441 = dma.hbm_to_vmem [thread:$0]  (!%p2439_p6), %s161_s21, 16384, %s163_s25, [#allocation6], %s2784_s5, %s2784_s5, %s2785_s6  }
  0x16   : > { %2444 = dma.hbm_to_vmem [thread:$0]  (!%p2439_p6), %s175_s28, 384, %s177_s30, [#allocation9], %s2784_s5, %s2784_s5, %s2785_s6  }
  0x17   : > { %s31_s10 = sadd.s32 1, %s2776_s17  ;;  %p29_p7 = scmp.eq.s32.totalorder %s28_s9, 0 }
  0x18   : > { %p38_p8 = scmp.ne.s32.totalorder %s2776_s17, %s2772_s16  ;;  %p39_p9 = scmp.eq.s32.totalorder %s2780_s18, 0 }
  0x19   : > { %p44_p10 = scmp.ne.s32.totalorder %s2772_s16, %s2768_s15  ;;  %p136_p13 = scmp.eq.s32.totalorder %s2846_s22, 1 }
  0x1a   : > { %s2876_s11 = scalar_select %p29_p7, %s2776_s17, %s31_s10  }
  0x1b   : > { %p2878_p11 = por %p39_p9, %p38_p8  ;;  %p2884_p12 = por %p45_p1, %p44_p10 }
  0x1c   : > { %3583 = sst [smem:[#allocation16_spill]] %s2876_s11  ;;  %p142_p0 = scmp.eq.s32.totalorder %s2382_s7, 1 }
  0x1d   : > { %p2458_p2 = scmp.lt.s32.totalorder %s2780_s18, 2  ;;  %s2891_s14 = sand.u32 1, %s2776_s17  }
  0x1e   : > { %p2893_p4 = por %p136_p13, %p38_p8  ;;  %p2897_p6 = por %p142_p0, %p44_p10 }
  0x1f   : > { %s196_s25 = scalar_lea.hbm %s3573_s0, %s2780_s18  ;;  %s193_s26 = scalar_lea.vmem [#allocation2], %s2891_s14 }
  0x20   : > { %s200_s27 = sshll.u32 %s193_s26, 4  ;;  %s198_s28 = sshll.u32 %s196_s25, 4  ;;  %s201_s27 = int_to_ptr.vmem [resolvable:$true] %s200_s27  ;;  %s199_s28 = int_to_ptr.hbm [resolvable:$true] %s198_s28 }
  0x21   : > { %p2908_p7 = pnand %p2458_p2, %p2878_p11  ;;  %s207_s30 = sand.u32 1, %s2780_s18  }
  0x22   : > { %s2387_s5 = sshll.u32 %s2891_s14, 3  ;;  %s191_s6 = scalar_lea.sflag [#allocation3], %s2891_s14 }
  0x23   : > { %s2642_s7 = sshra.s32 %s199_s28, 4  ;;  %p2646_p9 = pneg %p2908_p7  ;;  %s2643_s7 = int_to_ptr.hbm [resolvable:$true] %s2642_s7 }
  0x24   : > { %s2644_s9 = scalar_lea.hbm %s2643_s7, 1  ;;  %s2649_s21 = scalar_lea.hbm %s3573_s0, 2 }
  0x25   : > { %p2645_p8 = scmp.ne.s32.totalorder %s2643_s7, %s2644_s9  ;;  %p2650_p11 = scmp.lt.s32.totalorder %s2643_s7, %s3573_s0 }
  0x26   : > { %p2651_p0 = scmp.lt.s32.totalorder %s2649_s21, %s2644_s9 }
  0x27   : > { %p2647_p10 = pnand %p2646_p9, %p2645_p8 }
  0x28   : > { %p2652_p2 = por %p2651_p0, %p2650_p11 }
  0x29   : > { %p2648_p13 = pneg %p2647_p10 }
  0x2b   : > { %p2653_p5 = pnand %p2652_p2, %p2648_p13 }
  0x2d   : > { %2656 = shalt.err (!%p2653_p5)
}
  0x2e   : > { %2448 = dma.hbm_to_vmem [thread:$0]  (!%p2908_p7), %s199_s28, 16, %s201_s27, %s191_s6  }
  0x2f   : > { %s2388_s14 = sshll.u32 %s2780_s18, 3  ;;  %s211_s10 = scalar_lea.vmem [#allocation5], %s2387_s5 }
  0x30   : > { %s215_s3 = scalar_lea.hbm %s3574_s1, %s2388_s14  ;;  %s219_s12 = sshll.u32 %s211_s10, 4  ;;  %s220_s12 = int_to_ptr.vmem [resolvable:$true] %s219_s12 }
  0x31   : > { %s217_s11 = sshll.u32 %s215_s3, 4  ;;  %s208_s7 = scalar_lea.sflag [#allocation6], %s207_s30  ;;  %s218_s11 = int_to_ptr.hbm [resolvable:$true] %s217_s11 }
  0x32   : > { %s2672_s9 = sshra.s32 %s218_s11, 4  ;;  %s2679_s6 = scalar_lea.hbm %s3574_s1, 16  ;;  %s2673_s9 = int_to_ptr.hbm [resolvable:$true] %s2672_s9 }
  0x33   : > { %s2674_s21 = scalar_lea.hbm %s2673_s9, 8  ;;  %p2680_p13 = scmp.lt.s32.totalorder %s2673_s9, %s3574_s1 }
  0x34   : > { %p2675_p5 = scmp.ne.s32.totalorder %s2673_s9, %s2674_s21  ;;  %p2681_p11 = scmp.lt.s32.totalorder %s2679_s6, %s2674_s21 }
  0x36   : > { %p2677_p8 = pnand %p2675_p5, %p2646_p9  ;;  %p2682_p0 = por %p2681_p11, %p2680_p13 }
  0x38   : > { %p2678_p10 = pneg %p2677_p8 }
  0x3a   : > { %p2683_p2 = pnand %p2682_p0, %p2678_p10 }
  0x3c   : > { %2686 = shalt.err (!%p2683_p2)
}
  0x3d   : > { %2451 = dma.hbm_to_vmem [thread:$0]  (!%p2908_p7), %s218_s11, 128, %s220_s12, %s208_s7  }
  0x3e   : > { %228 = sbr.rel (%p2851_p3) target bundleno = 4438 (0x1156), region = 36  ;;  %s2946_s3 = sand.u32 (!%p2851_p3), 1, %s2772_s16  }
  0x3f   : > { %s231_s30 = scalar_lea.sflag (!%p2851_p3), [#allocation3], %s2946_s3  ;;  %s233_s5 = scalar_lea.vmem (!%p2851_p3), [#allocation2], %s2946_s3 }
  0x43   : > { %2747 = dma.done.wait (%p2884_p12), %s231_s30, 16  }
  0x44   : > { %2749 = vsyncadd (%p2884_p12), %s231_s30, 4294967280  ;;  %s239_s11 = sand.u32 1, %s2846_s22   ;;  %s2390_s23 = sshll.u32 %s2946_s3, 3 }
  0x45   : > { %s240_s29 = scalar_lea.sflag [#allocation6], %s239_s11  ;;  %s243_s25 = scalar_lea.vmem [#allocation5], %s2390_s23 }
  0x46   : > { %2751 = dma.done.wait (%p2884_p12), %s240_s29, 128  }
  0x47   : > { %2753 = vsyncadd (%p2884_p12), %s240_s29, 4294967168 }
  0x48   : > { %2755 = dma.done.wait (%p45_p1), [#allocation6], 16384  }
  0x49   : > { %2757 = vsyncadd (%p45_p1), [#allocation6], 4294950912 }
  0x4a   : > { %2759 = dma.done.wait (%p45_p1), [#allocation9], 384  }
  0x4b   : > { %2761 = vsyncadd (%p45_p1), [#allocation9], 4294966912  ;;  %v2970_v0 = vld [vmem:[%s243_s25] sm:$0xff]  ;;  %v287_v1 = vlaneseq  ;;  %v345_v10 = vld [vmem:[#allocation7 + $0x68] sm:$0xff]  ;;  %s2786_s13 = smov 96   ;;  %s2787_s14 = smov 120  }
  0x4c   : > { %291 = vadd.xlane.f32.xlu0 %v2970_v0  ;;  %v347_v8 = vld [vmem:[#allocation7 + $0x78] sm:$0xff]  ;;  %v346_v9 = vld [vmem:[#allocation7 + $0x70] sm:$0xff]  ;;  %v344_v11 = vld [vmem:[#allocation7 + $0x60] sm:$0xff]  ;;  %s2788_s26 = smov 112   ;;  %s2789_s10 = smov 104   ;;  %vm380_vm7 = vcmask 1047556  }
  0x4d   : > { %v2973_v2 = vand.u32 127, %v287_v1  ;;  %349 = vmatpush.msra.mxu0 %v347_v8  ;;  %v343_v12 = vld [vmem:[#allocation7 + $0x58] sm:$0xff]  ;;  %v342_v13 = vld [vmem:[#allocation7 + $0x50] sm:$0xff]  ;;  %v341_v14 = vld [vmem:[#allocation7 + $0x48] sm:$0xff]  ;;  %v2790_v59 = vmov 1983009808  }
  0x4e   : > { %v340_v15 = vld [vmem:[#allocation7 + $0x40] sm:$0xff]  ;;  %v339_v16 = vld [vmem:[#allocation7 + $0x38] sm:$0xff]  ;;  %v338_v19 = vld [vmem:[#allocation7 + $0x30] sm:$0xff]  ;;  %v385_v60 = vunpack.c.l.s4 %v2790_v59  ;;  %v2791_v8 = vmov 1934713408   ;;  %vm737_vm8 = vcmask 64512  }
  0x4f   : > { %vm289_vm0 = vcmp.lt.s32.totalorder %v2973_v2, 32  ;;  %350 = vmatpush.msra.mxu0 %v346_v9  ;;  %v337_v20 = vld [vmem:[#allocation7 + $0x28] sm:$0xff]  ;;  %v336_v21 = vld [vmem:[#allocation7 + $0x20] sm:$0xff]  ;;  %v335_v22 = vld [vmem:[#allocation7 + $0x18] sm:$0xff]  ;;  %v409_v9 = vunpack.c.l.s4 %v2791_v8  ;;  %s2793_s12 = smov 64   ;;  %s2794_s7 = smov 16  }
  0x50   : > { %v334_v24 = vld [vmem:[#allocation7 + $0x10] sm:$0xff]  ;;  %v333_v26 = vld [vmem:[#allocation7 + $0x8] sm:$0xff]  ;;  %v332_v28 = vld [vmem:[#allocation7] sm:$0xff]  ;;  %v3012_v62 = vunpack.c.0.s8 %v385_v60  ;;  %s2795_s9 = smov 8   ;;  %s2796_s21 = smov 24   ;;  %vm1101_vm10 = vcmask 130048  }
  0x51   : > { %351 = vmatpush.msra.mxu0 %v345_v10  ;;  %v2983_v43 = vld [vmem:[#allocation8] sm:$0xff]  ;;  %vm1103_vm11 = vcmask 195584   ;;  %vm1111_vm12 = vcmask 261120   ;;  %s2421_s27 = sshll.u32 %s2846_s22, 3  ;;  %s282_s24 = scalar_lea.vmem [#allocation10], %s2390_s23 }
  0x52   : > { %v328_v47 = vperm.slane %v2983_v43, 0  ;;  %v330_v50 = vperm.slane %v2983_v43, 1  ;;  %v348_v53 = vperm.slane %v2983_v43, 4  ;;  %s2269_s2 = scalar_lea.hbm %s3577_s4, %s2421_s27  ;;  %s2271_s30 = sshll.u32 %s282_s24, 4  ;;  %s2272_s30 = int_to_ptr.vmem [resolvable:$true] %s2271_s30 }
  0x53   : > { %352 = vmatpush.msra.mxu0 %v344_v11  ;;  %s2273_s22 = sshll.u32 %s2269_s2, 4  ;;  %s2274_s22 = int_to_ptr.hbm [resolvable:$true] %s2273_s22 }
  0x54   : > { %s2716_s11 = sshra.s32 %s2274_s22, 4  ;;  %s2717_s11 = int_to_ptr.hbm [resolvable:$true] %s2716_s11 }
  0x55   : > { %353 = vmatpush.msra.mxu0 %v343_v12  ;;  %s2718_s29 = scalar_lea.hbm %s2717_s11, 8  ;;  %p2723_p7 = scmp.lt.s32.totalorder %s2717_s11, %s3577_s4 }
  0x56   : > { %p2719_p1 = scmp.ne.s32.totalorder %s2717_s11, %s2718_s29 }
  0x57   : > { %354 = vmatpush.msra.mxu0 %v342_v13 }
  0x58   : > { %p2720_p3 = pnand %p2719_p1, %p2893_p4 }
  0x59   : > { %355 = vmatpush.msra.mxu0 %v341_v14  ;;  %v3028_v14 = vunpack.c.0.s8 %v409_v9 }
  0x5a   : > { %p2721_p12 = pneg %p2720_p3 }
  0x5b   : > { %356 = vmatpush.msra.mxu0 %v340_v15 }
  0x5d   : > { %357 = vmatpush.msra.mxu0 %v339_v16 }
  0x5f   : > { %358 = vmatpush.msra.mxu0 %v338_v19 }
  0x61   : > { %359 = vmatpush.msra.mxu0 %v337_v20 }
  0x63   : > { %360 = vmatpush.msra.mxu0 %v336_v21 }
  0x65   : > { %361 = vmatpush.msra.mxu0 %v335_v22 }
  0x67   : > { %362 = vmatpush.msra.mxu0 %v334_v24 }
  0x69   : > { %363 = vmatpush.msra.mxu0 %v333_v26 }
  0x6b   : > { %364 = vmatpush.msra.mxu0 %v332_v28 }
  0xbf   : > { %v292_v3 = vpop.xlane.xlu0 %291 }
  0xc0   : > { %v293_v4 = vmul.f32 0.03125, %v292_v3 }
  0xc2   : > { %v294_v5 = vsub.f32 %v2970_v0, %v293_v4 }
  0xc4   : > { %v2979_v6 = vsel %vm289_vm0, %v294_v5, 0.0 }
  0xc5   : > { %v296_v7 = vmul.f32 %v2979_v6, %v2979_v6 }
  0xc7   : > { %297 = vadd.xlane.f32.xlu0 %v296_v7 }
 0x13a   : > { %v298_v17 = vpop.xlane.xlu0 %297 }
 0x13b   : > { %v299_v18 = vmul.f32 0.032258064, %v298_v17 }
 0x13d   : > { %2529 = vrsqrt.f32 %v299_v18  ;;  %vm307_vm1 = vcmp.eq.f32.partialorder %v299_v18, inf  ;;  %v310_v33 = vand.u32 2147483648, %v299_v18  ;;  %vm309_vm2 = vcmp.eq.f32.partialorder %v299_v18, 0.0 }
 0x143   : > { %v2530_v23 = vpop.eup %2529 }
 0x144   : > { %v301_v25 = vmul.f32 %v2530_v23, %v299_v18 }
 0x146   : > { %v302_v27 = vmul.f32 %v2530_v23, %v301_v25 }
 0x148   : > { %v303_v29 = vmul.f32 0.5, %v302_v27 }
 0x14a   : > { %v304_v30 = vsub.f32 1.5, %v303_v29 }
 0x14c   : > { %v305_v31 = vmul.f32 %v2530_v23, %v304_v30 }
 0x14e   : > { %v306_v32 = vmul.f32 %v305_v31, %v299_v18 }
 0x150   : > { %v308_v34 = vsel %vm307_vm1, %v299_v18, %v306_v32 }
 0x151   : > { %v311_v35 = vsel %vm309_vm2, %v310_v33, %v308_v34 }
 0x152   : > { %v312_v36 = vadd.f32 1e-06, %v311_v35 }
 0x154   : > { %2531 = vrcp.f32 %v312_v36  ;;  %v324_v40 = vand.u32 2147483648, %v312_v36  ;;  %v322_v42 = vand.u32 2147483647, %v312_v36  ;;  %vm318_vm4 = vweird.f32 %v312_v36 }
 0x156   : > { %v325_v45 = vor.u32 1.1754944e-38, %v324_v40  ;;  %vm323_vm6 = vcmp.eq.f32.partialorder %v322_v42, 8.507059e+37 }
 0x15a   : > { %v2532_v37 = vpop.eup %2531 }
 0x15b   : > { %v314_v38 = vmul.f32 %v2532_v37, %v312_v36  ;;  %vm319_vm3 = vweird.f32 %v2532_v37 }
 0x15c   : > { %vm320_vm5 = vmor %vm318_vm4, %vm319_vm3 }
 0x15d   : > { %v315_v39 = vsub.f32 1.0, %v314_v38 }
 0x15f   : > { %v316_v41 = vmul.f32 %v2532_v37, %v315_v39 }
 0x161   : > { %v317_v44 = vadd.f32 %v2532_v37, %v316_v41 }
 0x163   : > { %v321_v46 = vsel %vm320_vm5, %v2532_v37, %v317_v44 }
 0x164   : > { %v326_v48 = vsel %vm323_vm6, %v325_v45, %v321_v46 }
 0x165   : > { %v327_v49 = vmul.f32 %v326_v48, %v2979_v6 }
 0x167   : > { %v329_v51 = vmul.f32 %v328_v47, %v327_v49 }
 0x169   : > { %v331_v52 = vadd.f32 %v330_v50, %v329_v51 }
 0x16b   : > { %365 = vmatmul.f32.vlgmr.msra.gmra.mxu0 %v331_v52 }
 0x1e8   : > { %v366_v54 = vpop.f32.mrf.mxu0 }
 0x1e9   : > { %v2989_v55 = vadd.f32 %v366_v54, %v348_v53 }
 0x1eb   : > { %490 = vrot.lane.b32.xlu0 %v2989_v55, %s2786_s13  ;;  %370 = vrot.lane.b32.xlu2 %v2989_v55, %s2787_s14  ;;  %v382_v61 = vrot.slane %v2989_v55, 4 }
 0x1ec   : > { %373 = vrot.lane.b32.xlu1 %v2989_v55, %s2788_s26 }
 0x1f4   : > { %376 = vrot.lane.b32.xlu1 %v2989_v55, %s2789_s10 }
 0x245   : > { %v3003_v57 = vpop.permute.xlu2 %370 }
 0x246   : > { %v394_v1 = vrot.slane %v3003_v57, 4 }
 0x25d   : > { %v491_v28 = vpop.permute.xlu0 %490 }
 0x25e   : > { %v2999_v56 = vpop.permute.xlu1 %373  ;;  %v504_v31 = vrot.slane %v491_v28, 4 }
 0x25f   : > { %494 = vrot.lane.b32.xlu2 %v2999_v56, %s2786_s13  ;;  %v379_v63 = vrot.slane %v2999_v56, 4  ;;  %v383_v3 = vsel %vm380_vm7, %v2999_v56, %v382_v61 }
 0x260   : > { %v391_v7 = vperm.slane %v383_v3, %v3012_v62 }
 0x261   : > { %v381_v6 = vsel %vm380_vm7, %v379_v63, %v2989_v55 }
 0x262   : > { %v387_v12 = vperm.slane %v381_v6, %v3012_v62  ;;  %v418_v13 = vrot.slane %v391_v7, 4 }
 0x264   : > { %v406_v18 = vrot.slane %v387_v12, 4 }
 0x266   : > { %v3005_v58 = vpop.permute.xlu1 %376 }
 0x267   : > { %492 = vrot.lane.b32.xlu2 %v3003_v57, %s2786_s13  ;;  %496 = vrot.lane.b32.xlu1 %v3005_v58, %s2786_s13  ;;  %v392_v4 = vrot.slane %v3005_v58, 4  ;;  %v395_v5 = vsel %vm380_vm7, %v3005_v58, %v394_v1 }
 0x268   : > { %v403_v11 = vperm.slane %v395_v5, %v3012_v62 }
 0x269   : > { %v393_v10 = vsel %vm380_vm7, %v392_v4, %v3003_v57 }
 0x26a   : > { %v399_v15 = vperm.slane %v393_v10, %v3012_v62  ;;  %v416_v16 = vrot.slane %v403_v11, 4  ;;  %v419_v17 = vsel %vm380_vm7, %v403_v11, %v418_v13 }
 0x26b   : > { %v427_v21 = vperm.slane %v419_v17, %v3028_v14 }
 0x26c   : > { %v404_v19 = vrot.slane %v399_v15, 4  ;;  %v407_v20 = vsel %vm380_vm7, %v399_v15, %v406_v18  ;;  %v417_v22 = vsel %vm380_vm7, %v416_v16, %v391_v7 }
 0x26d   : > { %v415_v24 = vperm.slane %v407_v20, %v3028_v14  ;;  %v423_v26 = vperm.slane %v417_v22, %v3028_v14  ;;  %v434_v27 = vrot.slane %v427_v21, 4 }
 0x26e   : > { %v405_v25 = vsel %vm380_vm7, %v404_v19, %v387_v12 }
 0x26f   : > { %v411_v29 = vperm.slane %v405_v25, %v3028_v14  ;;  %v430_v30 = vrot.slane %v415_v24, 4  ;;  %v432_v32 = vrot.slane %v423_v26, 4  ;;  %v435_v33 = vsel %vm380_vm7, 0.0, %v434_v27 }
 0x270   : > { %v452_v36 = vrot.slane %v435_v33, 4  ;;  %v447_v12 = vsel %vm380_vm7, %v434_v27, %v423_v26 }
 0x271   : > { %v428_v38 = vrot.slane %v411_v29, 4  ;;  %v431_v39 = vsel %vm380_vm7, 0.0, %v430_v30  ;;  %v433_v40 = vsel %vm380_vm7, 0.0, %v432_v32  ;;  %v436_v15 = vsel %vm380_vm7, %v430_v30, %v411_v29 }
 0x272   : > { %v441_v45 = vrot.slane %v431_v39, 4  ;;  %v453_v49 = vsel %vm380_vm7, %v452_v36, %v433_v40  ;;  %v440_v39 = vperm.slane %v436_v15, %v3012_v62 }
 0x273   : > { %v429_v48 = vsel %vm380_vm7, 0.0, %v428_v38  ;;  %v3053_v60 = vperm.slane %v453_v49, %v3012_v62 }
 0x274   : > { %v442_v59 = vsel %vm380_vm7, %v441_v45, %v429_v48 }
 0x275   : > { %v446_v8 = vperm.slane %v442_v59, %v3012_v62  ;;  %v470_v16 = vrot.slane %v3053_v60, 4 }
 0x277   : > { %v458_v24 = vrot.slane %v446_v8, 4 }
 0x2b9   : > { %v495_v23 = vpop.permute.xlu2 %494 }
 0x2ba   : > { %v502_v34 = vrot.slane %v495_v23, 4  ;;  %v505_v35 = vsel %vm380_vm7, %v495_v23, %v504_v31  ;;  %v451_v23 = vperm.slane %v447_v12, %v3012_v62 }
 0x2bb   : > { %v513_v42 = vperm.slane %v505_v35, %v3012_v62 }
 0x2bc   : > { %v503_v41 = vsel %vm380_vm7, %v502_v34, %v491_v28  ;;  %v471_v35 = vsel %vm380_vm7, %v470_v16, %v451_v23  ;;  %v472_v59 = vrot.slane %v451_v23, 4 }
 0x2bd   : > { %v509_v46 = vperm.slane %v503_v41, %v3012_v62  ;;  %v540_v52 = vrot.slane %v513_v42, 4  ;;  %v477_v45 = vperm.slane %v471_v35, %v3028_v14 }
 0x2be   : > { %v473_v12 = vsel %vm380_vm7, %v3053_v60, %v472_v59 }
 0x2bf   : > { %v528_v61 = vrot.slane %v509_v46, 4 }
 0x2c1   : > { %v493_v37 = vpop.permute.xlu2 %492 }
 0x2c2   : > { %v516_v44 = vrot.slane %v493_v37, 4 }
 0x2d9   : > { %v497_v47 = vpop.permute.xlu1 %496 }
 0x2da   : > { %v514_v50 = vrot.slane %v497_v47, 4  ;;  %v517_v51 = vsel %vm380_vm7, %v497_v47, %v516_v44  ;;  %v459_v44 = vsel %vm380_vm7, %v458_v24, %v440_v39 }
 0x2db   : > { %v525_v53 = vperm.slane %v517_v51, %v3012_v62 }
 0x2dc   : > { %v515_v54 = vsel %vm380_vm7, %v514_v50, %v493_v37 }
 0x2dd   : > { %v521_v63 = vperm.slane %v515_v54, %v3012_v62  ;;  %v538_v1 = vrot.slane %v525_v53, 4  ;;  %v541_v3 = vsel %vm380_vm7, %v525_v53, %v540_v52  ;;  %v460_v52 = vrot.slane %v440_v39, 4 }
 0x2de   : > { %v549_v4 = vperm.slane %v541_v3, %v3028_v14  ;;  %v465_v54 = vperm.slane %v459_v44, %v3028_v14  ;;  %v482_v3 = vrot.slane %v477_v45, 4 }
 0x2df   : > { %v526_v5 = vrot.slane %v521_v63, 4  ;;  %v529_v6 = vsel %vm380_vm7, %v521_v63, %v528_v61  ;;  %v539_v7 = vsel %vm380_vm7, %v538_v1, %v513_v42 }
 0x2e0   : > { %v537_v9 = vperm.slane %v529_v6, %v3028_v14  ;;  %v545_v10 = vperm.slane %v539_v7, %v3028_v14  ;;  %v556_v11 = vrot.slane %v549_v4, 4 }
 0x2e1   : > { %v527_v13 = vsel %vm380_vm7, %v526_v5, %v509_v46 }
 0x2e2   : > { %v533_v17 = vperm.slane %v527_v13, %v3028_v14  ;;  %v552_v18 = vrot.slane %v537_v9, 4  ;;  %v554_v19 = vrot.slane %v545_v10, 4  ;;  %v557_v20 = vsel %vm380_vm7, 0.0, %v556_v11 }
 0x2e3   : > { %v569_v21 = vsel %vm380_vm7, %v556_v11, %v545_v10  ;;  %v574_v22 = vrot.slane %v557_v20, 4  ;;  %v461_v9 = vsel %vm380_vm7, %v446_v8, %v460_v52  ;;  %v484_v10 = vrot.slane %v465_v54, 4 }
 0x2e4   : > { %v550_v25 = vrot.slane %v533_v17, 4  ;;  %v553_v26 = vsel %vm380_vm7, 0.0, %v552_v18  ;;  %v555_v27 = vsel %vm380_vm7, 0.0, %v554_v19  ;;  %v558_v28 = vsel %vm380_vm7, %v552_v18, %v533_v17 }
 0x2e5   : > { %v563_v29 = vrot.slane %v553_v26, 4  ;;  %v562_v30 = vperm.slane %v558_v28, %v3012_v62  ;;  %v573_v31 = vperm.slane %v569_v21, %v3012_v62  ;;  %v575_v32 = vsel %vm380_vm7, %v574_v22, %v555_v27  ;;  %v284_v21 = vld [vmem:[%s233_s5] sm:$0x1]  ;;  %s2259_s5 = scalar_lea.sflag [#allocation4], %s2946_s3 }
 0x2e6   : > { %v551_v33 = vsel %vm380_vm7, 0.0, %v550_v25  ;;  %v579_v34 = vperm.slane %v575_v32, %v3012_v62  ;;  %v483_v13 = vsel %vm380_vm7, %v482_v3, %v465_v54  ;;  %v469_v16 = vperm.slane %v461_v9, %v3028_v14 }
 0x2e7   : > { %v564_v36 = vsel %vm380_vm7, %v563_v29, %v551_v33  ;;  %v582_v37 = vrot.slane %v562_v30, 4  ;;  %v594_v38 = vrot.slane %v573_v31, 4  ;;  %v485_v8 = vsel %vm380_vm7, %v477_v45, %v484_v10 }
 0x2e8   : > { %v568_v40 = vperm.slane %v564_v36, %v3012_v62  ;;  %v592_v41 = vrot.slane %v579_v34, 4  ;;  %v481_v17 = vperm.slane %v473_v12, %v3028_v14  ;;  %v488_v60 = vrot.slane %v469_v16, 4 }
 0x2e9   : > { %v595_v42 = vsel %vm380_vm7, %v579_v34, %v594_v38  ;;  %vm285_vm9 = vcmp.gt.f32.partialorder %v284_v21, 0.0  ;;  %v2792_v22 = vmov -1e+09   ;;  %v2514_v38 = vpack.i.bf16 %v3005_v58, %v2999_v56 }
 0x2ea   : > { %v580_v46 = vrot.slane %v568_v40, 4  ;;  %v593_v47 = vsel %vm380_vm7, %v592_v41, %v573_v31  ;;  %v583_v48 = vsel %vm380_vm7, %v568_v40, %v582_v37  ;;  %v603_v49 = vperm.slane %v595_v42, %v3028_v14 }
 0x2eb   : > { %v599_v50 = vperm.slane %v593_v47, %v3028_v14  ;;  %v591_v51 = vperm.slane %v583_v48, %v3028_v14  ;;  %v486_v18 = vrot.slane %v481_v17, 4  ;;  %v489_v19 = vsel %vm380_vm7, %v481_v17, %v488_v60 }
 0x2ec   : > { %v581_v53 = vsel %vm380_vm7, %v580_v46, %v562_v30  ;;  %v608_v4 = vrot.slane %v603_v49, 4  ;;  %v286_v23 = vsel %vm285_vm9, 0.0, %v2792_v22  ;;  %v2509_v37 = vpack.i.bf16 %v3003_v57, %v2989_v55 }
 0x2ed   : > { %v587_v61 = vperm.slane %v581_v53, %v3028_v14  ;;  %v604_v63 = vrot.slane %v599_v50, 4  ;;  %v610_v1 = vrot.slane %v591_v51, 4  ;;  %v487_v20 = vsel %vm380_vm7, %v486_v18, %v469_v16 }
 0x2ee   : > { %v609_v15 = vsel %vm380_vm7, %v608_v4, %v591_v51  ;;  %v3117_v24 = vperm.slane %v286_v23, 0 }
 0x2ef   : > { %v605_v5 = vsel %vm380_vm7, %v604_v63, %v587_v61  ;;  %v611_v6 = vsel %vm380_vm7, %v603_v49, %v610_v1  ;;  %v606_v7 = vrot.slane %v587_v61, 4 }
 0x2f0   : > { %2394 = vmatpush.xpose.msk.msra.mxu1 %vm737_vm8, %v605_v5 }
 0x2f1   : > { %v607_v11 = vsel %vm380_vm7, %v599_v50, %v606_v7 }
 0x2f2   : > { %2396 = vmatpush.xpose.msk.msra.mxu2 %vm737_vm8, %v607_v11 }
 0x2f3   : > { %2395 = vmatmul.msk.f32.vlgmr.msra.gmra.mxu1 %vm737_vm8, %v483_v13 }
 0x2f4   : > { %2400 = vmatpush.xpose.msk.msrb.mxu1 %vm737_vm8, %v611_v6 }
 0x2f5   : > { %2397 = vmatmul.msk.f32.vlgmr.msra.gmra.mxu2 %vm737_vm8, %v485_v8 }
 0x2f6   : > { %2398 = vmatpush.xpose.msk.msrb.mxu2 %vm737_vm8, %v609_v15 }
 0x2fb   : > { %2401 = vmatmul.msk.f32.vlgmr.msrb.gmra.mxu1 %vm737_vm8, %v489_v19 }
 0x2fd   : > { %2399 = vmatmul.msk.f32.vlgmr.msrb.gmra.mxu2 %vm737_vm8, %v487_v20 }
 0x370   : > { %v761_v25 = vpop.f32.mrf.mxu1 }
 0x371   : > { %v762_v26 = vadd.f32 %v761_v25, %v3117_v24 }
 0x373   : > { %v842_v27 = vsel %vm737_vm8, %v762_v26, -inf }
 0x374   : > { %843 = vmax.xlane.f32.xlu1 %v842_v27 }
 0x378   : > { %v787_v28 = vpop.f32.mrf.mxu2  ;;  %v839_v29 = vpop.f32.mrf.mxu1 }
 0x379   : > { %v788_v30 = vadd.f32 %v787_v28, %v3117_v24  ;;  %v840_v31 = vadd.f32 %v839_v29, %v3117_v24 }
 0x37b   : > { %v845_v32 = vsel %vm737_vm8, %v788_v30, -inf  ;;  %v851_v33 = vsel %vm737_vm8, %v840_v31, -inf }
 0x37c   : > { %846 = vmax.xlane.f32.xlu0 %v845_v32  ;;  %852 = vmax.xlane.f32.xlu2 %v851_v33 }
 0x380   : > { %v813_v34 = vpop.f32.mrf.mxu2 }
 0x381   : > { %v814_v35 = vadd.f32 %v813_v34, %v3117_v24 }
 0x383   : > { %v848_v36 = vsel %vm737_vm8, %v814_v35, -inf }
 0x384   : > { %849 = vmax.xlane.f32.xlu2 %v848_v36 }
 0x38d   : > { %2510 = vrot.lane.b32.xlu1 %v2509_v37, %s2793_s12 }
 0x39c   : > { %2515 = vrot.lane.b32.xlu2 %v2514_v38, %s2793_s12 }
 0x3e7   : > { %v844_v39 = vpop.xlane.xlu1 %843 }
 0x3e8   : > { %v854_v40 = vsub.f32 %v762_v26, %v844_v39 }
 0x3ea   : > { %v858_v41 = vmul.f32 1.442695, %v854_v40 }
 0x3ec   : > { %2533 = vpow2.f32 %v858_v41 }
 0x3ef   : > { %v847_v42 = vpop.xlane.xlu0 %846  ;;  %v853_v44 = vpop.xlane.xlu2 %852 }
 0x3f0   : > { %v855_v45 = vsub.f32 %v788_v30, %v847_v42  ;;  %v857_v46 = vsub.f32 %v840_v31, %v853_v44 }
 0x3f2   : > { %v3133_v47 = vpop.eup %2533  ;;  %v860_v48 = vmul.f32 1.442695, %v855_v45  ;;  %v864_v55 = vmul.f32 1.442695, %v857_v46 }
 0x3f3   : > { %v866_v57 = vsel %vm737_vm8, %v3133_v47, 0.0 }
 0x3f4   : > { %2535 = vpow2.f32 %v860_v48  ;;  %867 = vadd.xlane.f32.xlu0 %v866_v57 }
 0x3f5   : > { %2537 = vpow2.f32 %v864_v55 }
 0x3f7   : > { %v850_v56 = vpop.xlane.xlu2 %849 }
 0x3f8   : > { %v856_v58 = vsub.f32 %v814_v35, %v850_v56 }
 0x3fa   : > { %v3137_v49 = vpop.eup %2535  ;;  %v862_v50 = vmul.f32 1.442695, %v856_v58 }
 0x3fb   : > { %v3139_v51 = vpop.eup %2537  ;;  %v869_v52 = vsel %vm737_vm8, %v3137_v49, 0.0 }
 0x3fc   : > { %2539 = vpow2.f32 %v862_v50  ;;  %870 = vadd.xlane.f32.xlu1 %v869_v52  ;;  %v875_v53 = vsel %vm737_vm8, %v3139_v51, 0.0 }
 0x3fd   : > { %876 = vadd.xlane.f32.xlu0 %v875_v53 }
 0x3ff   : > { %v2516_v54 = vpop.permute.xlu2 %2515  ;;  %v2511_v59 = vpop.permute.xlu1 %2510 }
 0x400   : > { %v2518_v61 = vunpack.i.h.bf16 %v2516_v54  ;;  %v2517_v63 = vunpack.i.l.bf16 %v2516_v54  ;;  %v2513_v1 = vunpack.i.h.bf16 %v2511_v59  ;;  %v2512_v3 = vunpack.i.l.bf16 %v2511_v59 }
 0x402   : > { %v3145_v4 = vpop.eup %2539  ;;  %v636_v5 = vrot.slane %v2518_v61, 4  ;;  %v624_v6 = vrot.slane %v2517_v63, 4  ;;  %v638_v7 = vrot.slane %v2513_v1, 4  ;;  %v626_v9 = vrot.slane %v2512_v3, 4 }
 0x403   : > { %v872_v10 = vsel %vm737_vm8, %v3145_v4, 0.0 }
 0x404   : > { %v637_v11 = vsel %vm380_vm7, %v636_v5, %v2513_v1  ;;  %v639_v12 = vsel %vm380_vm7, %v2518_v61, %v638_v7  ;;  %v625_v13 = vsel %vm380_vm7, %v624_v6, %v2512_v3  ;;  %v627_v15 = vsel %vm380_vm7, %v2517_v63, %v626_v9 }
 0x405   : > { %v643_v16 = vperm.slane %v637_v11, %v3012_v62  ;;  %v647_v8 = vperm.slane %v639_v12, %v3012_v62  ;;  %v631_v17 = vperm.slane %v625_v13, %v3012_v62  ;;  %v635_v60 = vperm.slane %v627_v15, %v3012_v62  ;;  %873 = vadd.xlane.f32.xlu0 %v872_v10 }
 0x407   : > { %v648_v18 = vrot.slane %v643_v16, 4  ;;  %v660_v19 = vrot.slane %v647_v8, 4  ;;  %v650_v20 = vrot.slane %v631_v17, 4  ;;  %v662_v21 = vrot.slane %v635_v60, 4 }
 0x409   : > { %v649_v22 = vsel %vm380_vm7, %v648_v18, %v631_v17  ;;  %v651_v23 = vsel %vm380_vm7, %v643_v16, %v650_v20  ;;  %v661_v25 = vsel %vm380_vm7, %v660_v19, %v635_v60  ;;  %v663_v26 = vsel %vm380_vm7, %v647_v8, %v662_v21 }
 0x40a   : > { %v655_v27 = vperm.slane %v649_v22, %v3028_v14  ;;  %v659_v28 = vperm.slane %v651_v23, %v3028_v14  ;;  %v667_v29 = vperm.slane %v661_v25, %v3028_v14  ;;  %v671_v30 = vperm.slane %v663_v26, %v3028_v14 }
 0x40c   : > { %v672_v31 = vrot.slane %v655_v27, 4  ;;  %v674_v32 = vrot.slane %v659_v28, 4  ;;  %v676_v33 = vrot.slane %v667_v29, 4  ;;  %v678_v34 = vrot.slane %v671_v30, 4 }
 0x40e   : > { %v675_v35 = vsel %vm380_vm7, 0.0, %v674_v32  ;;  %v679_v36 = vsel %vm380_vm7, 0.0, %v678_v34  ;;  %v680_v39 = vsel %vm380_vm7, %v674_v32, %v655_v27  ;;  %v691_v40 = vsel %vm380_vm7, %v678_v34, %v667_v29 }
 0x40f   : > { %v685_v37 = vrot.slane %v675_v35, 4  ;;  %v696_v38 = vrot.slane %v679_v36, 4  ;;  %v673_v41 = vsel %vm380_vm7, 0.0, %v672_v31  ;;  %v677_v42 = vsel %vm380_vm7, 0.0, %v676_v33 }
 0x410   : > { %v684_v44 = vperm.slane %v680_v39, %v3012_v62  ;;  %v695_v45 = vperm.slane %v691_v40, %v3012_v62 }
 0x411   : > { %v686_v46 = vsel %vm380_vm7, %v685_v37, %v673_v41  ;;  %v697_v48 = vsel %vm380_vm7, %v696_v38, %v677_v42 }
 0x412   : > { %v690_v55 = vperm.slane %v686_v46, %v3012_v62  ;;  %v701_v57 = vperm.slane %v697_v48, %v3012_v62  ;;  %v704_v56 = vrot.slane %v684_v44, 4  ;;  %v716_v58 = vrot.slane %v695_v45, 4 }
 0x414   : > { %v705_v50 = vsel %vm380_vm7, %v690_v55, %v704_v56  ;;  %v717_v52 = vsel %vm380_vm7, %v701_v57, %v716_v58  ;;  %v702_v53 = vrot.slane %v690_v55, 4  ;;  %v714_v54 = vrot.slane %v701_v57, 4 }
 0x415   : > { %v713_v59 = vperm.slane %v705_v50, %v3028_v14  ;;  %v725_v61 = vperm.slane %v717_v52, %v3028_v14 }
 0x416   : > { %v703_v63 = vsel %vm380_vm7, %v702_v53, %v684_v44  ;;  %v715_v1 = vsel %vm380_vm7, %v714_v54, %v695_v45 }
 0x417   : > { %v730_v3 = vrot.slane %v725_v61, 4  ;;  %v709_v5 = vperm.slane %v703_v63, %v3028_v14  ;;  %v721_v6 = vperm.slane %v715_v1, %v3028_v14  ;;  %v732_v7 = vrot.slane %v713_v59, 4 }
 0x419   : > { %v731_v9 = vsel %vm380_vm7, %v730_v3, %v713_v59  ;;  %v726_v10 = vrot.slane %v721_v6, 4  ;;  %v728_v11 = vrot.slane %v709_v5, 4  ;;  %v733_v15 = vsel %vm380_vm7, %v725_v61, %v732_v7 }
 0x41a   : > { %950 = vmatpush.msra.mxu1 %v731_v9 }
 0x41b   : > { %v727_v12 = vsel %vm380_vm7, %v726_v10, %v709_v5  ;;  %v729_v13 = vsel %vm380_vm7, %v721_v6, %v728_v11 }
 0x41c   : > { %904 = vmatpush.msra.mxu2 %v727_v12  ;;  %927 = vmatpush.msra.mxu3 %v729_v13 }
 0x41e   : > { %973 = vmatpush.msrb.mxu2 %v733_v15 }
 0x467   : > { %v868_v16 = vpop.xlane.xlu0 %867 }
 0x468   : > { %2541 = vrcp.f32 %v868_v16 }
 0x46e   : > { %v2542_v8 = vpop.eup %2541 }
 0x46f   : > { %v882_v17 = vmul.f32 %v2542_v8, %v3133_v47  ;;  %v871_v60 = vpop.xlane.xlu1 %870 }
 0x470   : > { %v877_v18 = vpop.xlane.xlu0 %876  ;;  %2543 = vrcp.f32 %v871_v60 }
 0x471   : > { %2545 = vrcp.f32 %v877_v18  ;;  %2402 = vmatmul.msk.f32.vlgmr.msra.gmra.mxu2 %vm737_vm8, %v882_v17 }
 0x476   : > { %v2544_v19 = vpop.eup %2543 }
 0x477   : > { %v2546_v20 = vpop.eup %2545  ;;  %v883_v21 = vmul.f32 %v2544_v19, %v3137_v49 }
 0x478   : > { %v885_v22 = vmul.f32 %v2546_v20, %v3139_v51  ;;  %v874_v23 = vpop.xlane.xlu0 %873 }
 0x479   : > { %2547 = vrcp.f32 %v874_v23  ;;  %2403 = vmatmul.msk.f32.vlgmr.msra.gmra.mxu3 %vm737_vm8, %v883_v21 }
 0x47a   : > { %2405 = vmatmul.msk.f32.vlgmr.msrb.gmra.mxu2 %vm737_vm8, %v885_v22 }
 0x47f   : > { %v2548_v25 = vpop.eup %2547 }
 0x480   : > { %v884_v47 = vmul.f32 %v2548_v25, %v3145_v4 }
 0x482   : > { %2404 = vmatmul.msk.f32.vlgmr.msra.gmra.mxu1 %vm737_vm8, %v884_v47 }
 0x4f4   : > { %v906_v26 = vpop.f32.mrf.mxu2 }
 0x4f5   : > { %v980_v30 = vrot.slane %v906_v26, 4 }
 0x4fc   : > { %v929_v27 = vpop.f32.mrf.mxu3 }
 0x4fd   : > { %v992_v28 = vrot.slane %v929_v27, 4  ;;  %v975_v29 = vpop.f32.mrf.mxu2 }
 0x4fe   : > { %v990_v31 = vrot.slane %v975_v29, 4 }
 0x4ff   : > { %v993_v49 = vsel %vm380_vm7, %v975_v29, %v992_v28  ;;  %v952_v51 = vpop.f32.mrf.mxu1 }
 0x500   : > { %v991_v32 = vsel %vm380_vm7, %v990_v31, %v929_v27  ;;  %v1001_v33 = vperm.slane %v993_v49, %v3012_v62  ;;  %v978_v34 = vrot.slane %v952_v51, 4  ;;  %v981_v35 = vsel %vm380_vm7, %v952_v51, %v980_v30 }
 0x501   : > { %v997_v4 = vperm.slane %v991_v32, %v3012_v62  ;;  %v989_v36 = vperm.slane %v981_v35, %v3012_v62  ;;  %v1109_v32 = vld [vmem:[#allocation7 + $0x98] sm:$0xff]  ;;  %v1106_v35 = vld [vmem:[#allocation7 + $0x80] sm:$0xff] }
 0x502   : > { %v1014_v37 = vrot.slane %v1001_v33, 4  ;;  %v979_v38 = vsel %vm380_vm7, %v978_v34, %v906_v26  ;;  %1127 = vmatpush.msrb.mxu3 %v1109_v32  ;;  %v1107_v34 = vld [vmem:[#allocation7 + $0x88] sm:$0xff]  ;;  %v1223_v32 = vld [vmem:[#allocation7 + $0x1b0] sm:$0xff] }
 0x503   : > { %v1002_v39 = vrot.slane %v997_v4, 4  ;;  %v985_v40 = vperm.slane %v979_v38, %v3012_v62  ;;  %v1016_v41 = vrot.slane %v989_v36, 4 }
 0x504   : > { %v1015_v42 = vsel %vm380_vm7, %v1014_v37, %v989_v36 }
 0x505   : > { %v1003_v44 = vsel %vm380_vm7, %v1002_v39, %v985_v40  ;;  %v1004_v45 = vrot.slane %v985_v40, 4  ;;  %v1017_v46 = vsel %vm380_vm7, %v1001_v33, %v1016_v41  ;;  %v1021_v48 = vperm.slane %v1015_v42, %v3028_v14  ;;  %v1108_v33 = vld [vmem:[#allocation7 + $0x90] sm:$0xff] }
 0x506   : > { %v1009_v55 = vperm.slane %v1003_v44, %v3028_v14  ;;  %v1025_v57 = vperm.slane %v1017_v46, %v3028_v14  ;;  %1128 = vmatpush.msrb.mxu3 %v1108_v33  ;;  %v1110_v41 = vperm.slane %v2983_v43, 5 }
 0x507   : > { %v1005_v56 = vsel %vm380_vm7, %v997_v4, %v1004_v45  ;;  %v1030_v50 = vrot.slane %v1021_v48, 4 }
 0x508   : > { %v1013_v58 = vperm.slane %v1005_v56, %v3028_v14  ;;  %v1032_v52 = vrot.slane %v1025_v57, 4  ;;  %v1026_v53 = vrot.slane %v1009_v55, 4  ;;  %1129 = vmatpush.msrb.mxu3 %v1107_v34  ;;  %v1222_v34 = vld [vmem:[#allocation7 + $0x1a8] sm:$0xff] }
 0x509   : > { %v1031_v5 = vsel %vm380_vm7, 0.0, %v1030_v50  ;;  %v1192_v50 = vld [vmem:[#allocation7 + $0x170] sm:$0xff] }
 0x50a   : > { %v1028_v54 = vrot.slane %v1013_v58, 4  ;;  %v1033_v59 = vsel %vm380_vm7, 0.0, %v1032_v52  ;;  %v1045_v61 = vsel %vm380_vm7, %v1032_v52, %v1021_v48  ;;  %v1027_v12 = vsel %vm380_vm7, 0.0, %v1026_v53  ;;  %1130 = vmatpush.msrb.mxu3 %v1106_v35  ;;  %v1193_v58 = vld [vmem:[#allocation7 + $0x178] sm:$0xff]  ;;  %v1190_v52 = vld [vmem:[#allocation7 + $0x160] sm:$0xff] }
 0x50b   : > { %v1049_v63 = vperm.slane %v1045_v61, %v3012_v62  ;;  %v1050_v1 = vrot.slane %v1033_v59, 4  ;;  %1195 = vmatpush.msrb.mxu1 %v1193_v58  ;;  %v1189_v53 = vld [vmem:[#allocation7 + $0x158] sm:$0xff]  ;;  %v1187_v59 = vld [vmem:[#allocation7 + $0x148] sm:$0xff]  ;;  %v1186_v61 = vld [vmem:[#allocation7 + $0x140] sm:$0xff] }
 0x50c   : > { %v1029_v3 = vsel %vm380_vm7, 0.0, %v1028_v54  ;;  %v1034_v6 = vsel %vm380_vm7, %v1028_v54, %v1009_v55  ;;  %v1188_v54 = vld [vmem:[#allocation7 + $0x150] sm:$0xff] }
 0x50d   : > { %v1051_v7 = vsel %vm380_vm7, %v1050_v1, %v1031_v5  ;;  %v1038_v9 = vperm.slane %v1034_v6, %v3012_v62  ;;  %v1039_v10 = vrot.slane %v1029_v3, 4  ;;  %v1070_v11 = vrot.slane %v1049_v63, 4  ;;  %1196 = vmatpush.msrb.mxu1 %v1192_v50  ;;  %v1185_v1 = vld [vmem:[#allocation7 + $0x138] sm:$0xff]  ;;  %v1184_v5 = vld [vmem:[#allocation7 + $0x130] sm:$0xff]  ;;  %v1183_v6 = vld [vmem:[#allocation7 + $0x128] sm:$0xff] }
 0x50e   : > { %v1055_v13 = vperm.slane %v1051_v7, %v3012_v62  ;;  %v1182_v7 = vld [vmem:[#allocation7 + $0x120] sm:$0xff]  ;;  %v1219_v50 = vld [vmem:[#allocation7 + $0x190] sm:$0xff] }
 0x50f   : > { %v1040_v15 = vsel %vm380_vm7, %v1039_v10, %v1027_v12  ;;  %v1058_v16 = vrot.slane %v1038_v9, 4  ;;  %v1180_v12 = vld [vmem:[#allocation7 + $0x110] sm:$0xff] }
 0x510   : > { %v1044_v8 = vperm.slane %v1040_v15, %v3012_v62  ;;  %v1071_v17 = vsel %vm380_vm7, %v1055_v13, %v1070_v11  ;;  %v1068_v60 = vrot.slane %v1055_v13, 4  ;;  %v1179_v15 = vld [vmem:[#allocation7 + $0x108] sm:$0xff] }
 0x511   : > { %v1079_v18 = vperm.slane %v1071_v17, %v3028_v14 }
 0x512   : > { %v1059_v19 = vsel %vm380_vm7, %v1044_v8, %v1058_v16  ;;  %v1056_v20 = vrot.slane %v1044_v8, 4  ;;  %v1069_v21 = vsel %vm380_vm7, %v1068_v60, %v1049_v63  ;;  %v1178_v8 = vld [vmem:[#allocation7 + $0x100] sm:$0xff]  ;;  %v1232_v60 = vld [vmem:[#allocation7 + $0x1f8] sm:$0xff] }
 0x513   : > { %v1067_v22 = vperm.slane %v1059_v19, %v3028_v14  ;;  %v1084_v23 = vrot.slane %v1079_v18, 4  ;;  %v1075_v25 = vperm.slane %v1069_v21, %v3028_v14  ;;  %1234 = vmatpush.msra.mxu2 %v1232_v60  ;;  %v1306_v60 = vld [vmem:[#allocation7 + $0x238] sm:$0xff] }
 0x514   : > { %v1057_v47 = vsel %vm380_vm7, %v1056_v20, %v1038_v9  ;;  %v1181_v9 = vld [vmem:[#allocation7 + $0x118] sm:$0xff]  ;;  %v1230_v20 = vld [vmem:[#allocation7 + $0x1e8] sm:$0xff] }
 0x515   : > { %v1085_v26 = vsel %vm380_vm7, %v1084_v23, %v1067_v22  ;;  %v1063_v27 = vperm.slane %v1057_v47, %v3028_v14  ;;  %v1080_v28 = vrot.slane %v1075_v25, 4  ;;  %v1086_v49 = vrot.slane %v1067_v22, 4  ;;  %v1229_v23 = vld [vmem:[#allocation7 + $0x1e0] sm:$0xff] }
 0x516   : > { %1093 = vrot.lane.b32.xlu0 %v1085_v26, %s2794_s7  ;;  %v1228_v26 = vld [vmem:[#allocation7 + $0x1d8] sm:$0xff] }
 0x517   : > { %v1082_v29 = vrot.slane %v1063_v27, 4  ;;  %v1081_v30 = vsel %vm380_vm7, %v1080_v28, %v1063_v27  ;;  %v1087_v51 = vsel %vm380_vm7, %v1079_v18, %v1086_v49  ;;  %v1231_v18 = vld [vmem:[#allocation7 + $0x1f0] sm:$0xff] }
 0x518   : > { %1235 = vmatpush.msra.mxu2 %v1231_v18  ;;  %v1227_v28 = vld [vmem:[#allocation7 + $0x1d0] sm:$0xff] }
 0x519   : > { %v1083_v31 = vsel %vm380_vm7, %v1075_v25, %v1082_v29  ;;  %v1226_v29 = vld [vmem:[#allocation7 + $0x1c8] sm:$0xff] }
 0x51a   : > { %1089 = vrot.lane.b32.xlu2 %v1083_v31, %s2795_s9  ;;  %1236 = vmatpush.msra.mxu2 %v1230_v20  ;;  %v1224_v31 = vld [vmem:[#allocation7 + $0x1b8] sm:$0xff]  ;;  %v1304_v20 = vld [vmem:[#allocation7 + $0x228] sm:$0xff] }
 0x51c   : > { %1237 = vmatpush.msra.mxu2 %v1229_v23 }
 0x51e   : > { %1238 = vmatpush.msra.mxu2 %v1228_v26 }
 0x520   : > { %1239 = vmatpush.msra.mxu2 %v1227_v28 }
 0x522   : > { %1097 = vrot.lane.b32.xlu2 %v1087_v51, %s2796_s21  ;;  %1240 = vmatpush.msra.mxu2 %v1226_v29  ;;  %v1299_v29 = vld [vmem:[#allocation7 + $0x200] sm:$0xff] }
 0x574   : > { %v1090_v4 = vpop.permute.xlu2 %1089 }
 0x575   : > { %v1100_v36 = vsel %vm737_vm8, %v1081_v30, %v1090_v4  ;;  %v1225_v30 = vld [vmem:[#allocation7 + $0x1c0] sm:$0xff] }
 0x576   : > { %1241 = vmatpush.msra.mxu2 %v1225_v30 }
 0x578   : > { %1242 = vmatpush.msra.mxu2 %v1224_v31 }
 0x57a   : > { %1243 = vmatpush.msra.mxu2 %v1223_v32 }
 0x57c   : > { %v1098_v38 = vpop.permute.xlu2 %1097  ;;  %1244 = vmatpush.msra.mxu2 %v1222_v34 }
 0x588   : > { %v1094_v37 = vpop.permute.xlu0 %1093 }
 0x589   : > { %v1102_v39 = vsel %vm1101_vm10, %v1100_v36, %v1094_v37  ;;  %v1221_v37 = vld [vmem:[#allocation7 + $0x1a0] sm:$0xff] }
 0x58a   : > { %v1104_v40 = vsel %vm1103_vm11, %v1102_v39, %v1098_v38  ;;  %v1220_v39 = vld [vmem:[#allocation7 + $0x198] sm:$0xff]  ;;  %1245 = vmatpush.msra.mxu2 %v1221_v37 }
 0x58b   : > { %2406 = vmatmul.msk.f32.vlgmr.msrb.gmra.mxu3 %vm1111_vm12, %v1104_v40 }
 0x58c   : > { %1246 = vmatpush.msra.mxu2 %v1220_v39 }
 0x58e   : > { %1247 = vmatpush.msra.mxu2 %v1219_v50 }
 0x60e   : > { %v1132_v42 = vpop.f32.mrf.mxu3 }
 0x60f   : > { %v1133_v44 = vadd.f32 %v1132_v42, %v1110_v41  ;;  %v1173_v42 = vperm.slane %v2983_v43, 2 }
 0x611   : > { %v3246_v45 = vadd.f32 %v1133_v44, %v2970_v0  ;;  %v1191_v0 = vld [vmem:[#allocation7 + $0x168] sm:$0xff] }
 0x612   : > { %1197 = vmatpush.msrb.mxu1 %v1191_v0  ;;  %v1218_v0 = vld [vmem:[#allocation7 + $0x188] sm:$0xff] }
 0x613   : > { %1136 = vadd.xlane.f32.xlu2 %v3246_v45  ;;  %1248 = vmatpush.msra.mxu2 %v1218_v0 }
 0x614   : > { %1198 = vmatpush.msrb.mxu1 %v1190_v52  ;;  %v1217_v52 = vld [vmem:[#allocation7 + $0x180] sm:$0xff] }
 0x615   : > { %1249 = vmatpush.msra.mxu2 %v1217_v52 }
 0x616   : > { %1199 = vmatpush.msrb.mxu1 %v1189_v53 }
 0x618   : > { %1200 = vmatpush.msrb.mxu1 %v1188_v54 }
 0x61a   : > { %1201 = vmatpush.msrb.mxu1 %v1187_v59 }
 0x61c   : > { %1202 = vmatpush.msrb.mxu1 %v1186_v61 }
 0x61e   : > { %1203 = vmatpush.msrb.mxu1 %v1185_v1 }
 0x620   : > { %1204 = vmatpush.msrb.mxu1 %v1184_v5 }
 0x622   : > { %1205 = vmatpush.msrb.mxu1 %v1183_v6 }
 0x624   : > { %1206 = vmatpush.msrb.mxu1 %v1182_v7 }
 0x626   : > { %1207 = vmatpush.msrb.mxu1 %v1181_v9 }
 0x628   : > { %1208 = vmatpush.msrb.mxu1 %v1180_v12  ;;  %v1311_v12 = vld [vmem:[#allocation7 + $0x260] sm:$0xff] }
 0x62a   : > { %1209 = vmatpush.msrb.mxu1 %v1179_v15  ;;  %v1309_v15 = vld [vmem:[#allocation7 + $0x250] sm:$0xff] }
 0x62c   : > { %1210 = vmatpush.msrb.mxu1 %v1178_v8  ;;  %v1307_v8 = vld [vmem:[#allocation7 + $0x240] sm:$0xff] }
 0x686   : > { %v1137_v46 = vpop.xlane.xlu2 %1136 }
 0x687   : > { %v1138_v48 = vmul.f32 0.03125, %v1137_v46 }
 0x689   : > { %v1139_v55 = vsub.f32 %v3246_v45, %v1138_v48  ;;  %v2581_v48 = vld [vmem:[#allocation8] sm:$0xff] }
 0x68a   : > { %v1194_v53 = vperm.slane %v2581_v48, 6  ;;  %v1233_v43 = vperm.slane %v2581_v48, 7 }
 0x68b   : > { %v3252_v57 = vsel %vm289_vm0, %v1139_v55, 0.0  ;;  %v1175_v55 = vperm.slane %v2581_v48, 3 }
 0x68c   : > { %v1141_v56 = vmul.f32 %v3252_v57, %v3252_v57 }
 0x68e   : > { %1142 = vadd.xlane.f32.xlu0 %v1141_v56 }
 0x701   : > { %v1143_v63 = vpop.xlane.xlu0 %1142 }
 0x702   : > { %v1144_v3 = vmul.f32 0.032258064, %v1143_v63 }
 0x704   : > { %2549 = vrsqrt.f32 %v1144_v3  ;;  %vm1152_vm13 = vcmp.eq.f32.partialorder %v1144_v3, inf  ;;  %v1155_v22 = vand.u32 2147483648, %v1144_v3  ;;  %vm1154_vm14 = vcmp.eq.f32.partialorder %v1144_v3, 0.0 }
 0x70a   : > { %v2550_v10 = vpop.eup %2549 }
 0x70b   : > { %v1146_v11 = vmul.f32 %v2550_v10, %v1144_v3 }
 0x70d   : > { %v1147_v13 = vmul.f32 %v2550_v10, %v1146_v11  ;;  %v1313_v11 = vld [vmem:[#allocation7 + $0x270] sm:$0xff] }
 0x70f   : > { %v1148_v16 = vmul.f32 0.5, %v1147_v13  ;;  %v1310_v13 = vld [vmem:[#allocation7 + $0x258] sm:$0xff] }
 0x711   : > { %v1149_v17 = vsub.f32 1.5, %v1148_v16  ;;  %v1308_v16 = vld [vmem:[#allocation7 + $0x248] sm:$0xff] }
 0x713   : > { %v1150_v19 = vmul.f32 %v2550_v10, %v1149_v17  ;;  %v1314_v10 = vld [vmem:[#allocation7 + $0x278] sm:$0xff] }
 0x714   : > { %1316 = vmatpush.msra.mxu3 %v1314_v10 }
 0x715   : > { %v1151_v21 = vmul.f32 %v1150_v19, %v1144_v3  ;;  %v1305_v19 = vld [vmem:[#allocation7 + $0x230] sm:$0xff] }
 0x716   : > { %1317 = vmatpush.msra.mxu3 %v1313_v11 }
 0x717   : > { %v1153_v25 = vsel %vm1152_vm13, %v1144_v3, %v1151_v21  ;;  %v1303_v21 = vld [vmem:[#allocation7 + $0x220] sm:$0xff] }
 0x718   : > { %v1156_v47 = vsel %vm1154_vm14, %v1155_v22, %v1153_v25  ;;  %v1302_v22 = vld [vmem:[#allocation7 + $0x218] sm:$0xff] }
 0x719   : > { %v1157_v27 = vadd.f32 1e-06, %v1156_v47  ;;  %v1301_v47 = vld [vmem:[#allocation7 + $0x210] sm:$0xff] }
 0x71b   : > { %2551 = vrcp.f32 %v1157_v27  ;;  %v1169_v35 = vand.u32 2147483648, %v1157_v27  ;;  %v1167_v36 = vand.u32 2147483647, %v1157_v27  ;;  %vm1163_vm1 = vweird.f32 %v1157_v27 }
 0x71d   : > { %v1170_v40 = vor.u32 1.1754944e-38, %v1169_v35  ;;  %vm1168_vm3 = vcmp.eq.f32.partialorder %v1167_v36, 8.507059e+37 }
 0x721   : > { %v2552_v49 = vpop.eup %2551 }
 0x722   : > { %v1159_v51 = vmul.f32 %v2552_v49, %v1157_v27  ;;  %vm1164_vm15 = vweird.f32 %v2552_v49  ;;  %v1300_v27 = vld [vmem:[#allocation7 + $0x208] sm:$0xff] }
 0x723   : > { %vm1165_vm2 = vmor %vm1163_vm1, %vm1164_vm15 }
 0x724   : > { %v1160_v33 = vsub.f32 1.0, %v1159_v51 }
 0x726   : > { %v1161_v4 = vmul.f32 %v2552_v49, %v1160_v33 }
 0x728   : > { %v1162_v38 = vadd.f32 %v2552_v49, %v1161_v4 }
 0x72a   : > { %v1166_v41 = vsel %vm1165_vm2, %v2552_v49, %v1162_v38 }
 0x72b   : > { %v1171_v44 = vsel %vm1168_vm3, %v1170_v40, %v1166_v41  ;;  %v3269_v40 = vld [vmem:[#allocation8 + $0x8] sm:$0xff] }
 0x72c   : > { %v1172_v46 = vmul.f32 %v1171_v44, %v3252_v57  ;;  %v1315_v0 = vperm.slane %v3269_v40, 4 }
 0x72e   : > { %v1174_v56 = vmul.f32 %v1173_v42, %v1172_v46  ;;  %v1294_v46 = vperm.slane %v3269_v40, 0 }
 0x730   : > { %v1176_v58 = vadd.f32 %v1175_v55, %v1174_v56  ;;  %v1296_v56 = vperm.slane %v3269_v40, 1 }
 0x732   : > { %1211 = vmatmul.f32.vlgmr.msrb.gmra.mxu1 %v1176_v58 }
 0x7af   : > { %v1212_v54 = vpop.f32.mrf.mxu1 }
 0x7b0   : > { %v1213_v59 = vadd.f32 %v1212_v54, %v1194_v53 }
 0x7b2   : > { %v1215_v61 = vmax.f32 %v1213_v59, 0.0 }
 0x7b4   : > { %1250 = vmatmul.f32.vlgmr.msra.gmra.mxu2 %v1215_v61 }
 0x837   : > { %v1251_v63 = vpop.f32.mrf.mxu2 }
 0x838   : > { %v1252_v1 = vadd.f32 %v1251_v63, %v1233_v43 }
 0x83a   : > { %v3259_v57 = vadd.f32 %v1252_v1, %v3246_v45  ;;  %v1312_v45 = vld [vmem:[#allocation7 + $0x268] sm:$0xff] }
 0x83b   : > { %1318 = vmatpush.msra.mxu3 %v1312_v45 }
 0x83c   : > { %1257 = vadd.xlane.f32.xlu1 %v3259_v57 }
 0x83d   : > { %1319 = vmatpush.msra.mxu3 %v1311_v12 }
 0x83f   : > { %1320 = vmatpush.msra.mxu3 %v1310_v13 }
 0x841   : > { %1321 = vmatpush.msra.mxu3 %v1309_v15 }
 0x843   : > { %1322 = vmatpush.msra.mxu3 %v1308_v16 }
 0x845   : > { %1323 = vmatpush.msra.mxu3 %v1307_v8 }
 0x847   : > { %1324 = vmatpush.msra.mxu3 %v1306_v60 }
 0x849   : > { %1325 = vmatpush.msra.mxu3 %v1305_v19 }
 0x84b   : > { %1326 = vmatpush.msra.mxu3 %v1304_v20 }
 0x84d   : > { %1327 = vmatpush.msra.mxu3 %v1303_v21 }
 0x84f   : > { %1328 = vmatpush.msra.mxu3 %v1302_v22 }
 0x851   : > { %1329 = vmatpush.msra.mxu3 %v1301_v47 }
 0x853   : > { %1330 = vmatpush.msra.mxu3 %v1300_v27 }
 0x855   : > { %1331 = vmatpush.msra.mxu3 %v1299_v29 }
 0x8af   : > { %v1258_v3 = vpop.xlane.xlu1 %1257 }
 0x8b0   : > { %v1259_v5 = vmul.f32 0.03125, %v1258_v3 }
 0x8b2   : > { %v1260_v6 = vsub.f32 %v3259_v57, %v1259_v5 }
 0x8b4   : > { %v3265_v7 = vsel %vm289_vm0, %v1260_v6, 0.0 }
 0x8b5   : > { %v1262_v9 = vmul.f32 %v3265_v7, %v3265_v7 }
 0x8b7   : > { %1263 = vadd.xlane.f32.xlu1 %v1262_v9 }
 0x92a   : > { %v1264_v17 = vpop.xlane.xlu1 %1263 }
 0x92b   : > { %v1265_v18 = vmul.f32 0.032258064, %v1264_v17 }
 0x92d   : > { %2553 = vrsqrt.f32 %v1265_v18  ;;  %vm1273_vm4 = vcmp.eq.f32.partialorder %v1265_v18, inf  ;;  %v1276_v51 = vand.u32 2147483648, %v1265_v18  ;;  %vm1275_vm5 = vcmp.eq.f32.partialorder %v1265_v18, 0.0 }
 0x933   : > { %v2554_v23 = vpop.eup %2553 }
 0x934   : > { %v1267_v25 = vmul.f32 %v2554_v23, %v1265_v18 }
 0x936   : > { %v1268_v26 = vmul.f32 %v2554_v23, %v1267_v25 }
 0x938   : > { %v1269_v28 = vmul.f32 0.5, %v1268_v26 }
 0x93a   : > { %v1270_v30 = vsub.f32 1.5, %v1269_v28 }
 0x93c   : > { %v1271_v31 = vmul.f32 %v2554_v23, %v1270_v30 }
 0x93e   : > { %v1272_v49 = vmul.f32 %v1271_v31, %v1265_v18 }
 0x940   : > { %v1274_v32 = vsel %vm1273_vm4, %v1265_v18, %v1272_v49 }
 0x941   : > { %v1277_v33 = vsel %vm1275_vm5, %v1276_v51, %v1274_v32 }
 0x942   : > { %v1278_v34 = vadd.f32 1e-06, %v1277_v33 }
 0x944   : > { %2555 = vrcp.f32 %v1278_v34  ;;  %v1290_v37 = vand.u32 2147483648, %v1278_v34  ;;  %v1288_v39 = vand.u32 2147483647, %v1278_v34  ;;  %vm1284_vm9 = vweird.f32 %v1278_v34 }
 0x946   : > { %v1291_v42 = vor.u32 1.1754944e-38, %v1290_v37  ;;  %vm1289_vm14 = vcmp.eq.f32.partialorder %v1288_v39, 8.507059e+37 }
 0x94a   : > { %v2556_v35 = vpop.eup %2555 }
 0x94b   : > { %v1280_v4 = vmul.f32 %v2556_v35, %v1278_v34  ;;  %vm1285_vm6 = vweird.f32 %v2556_v35 }
 0x94c   : > { %vm1286_vm13 = vmor %vm1284_vm9, %vm1285_vm6 }
 0x94d   : > { %v1281_v36 = vsub.f32 1.0, %v1280_v4 }
 0x94f   : > { %v1282_v38 = vmul.f32 %v2556_v35, %v1281_v36 }
 0x951   : > { %v1283_v41 = vadd.f32 %v2556_v35, %v1282_v38 }
 0x953   : > { %v1287_v44 = vsel %vm1286_vm13, %v2556_v35, %v1283_v41 }
 0x954   : > { %v1292_v48 = vsel %vm1289_vm14, %v1291_v42, %v1287_v44 }
 0x955   : > { %v1293_v55 = vmul.f32 %v1292_v48, %v3265_v7 }
 0x957   : > { %v1295_v58 = vmul.f32 %v1294_v46, %v1293_v55 }
 0x959   : > { %v1297_v50 = vadd.f32 %v1296_v56, %v1295_v58 }
 0x95b   : > { %1332 = vmatmul.f32.vlgmr.msra.gmra.mxu3 %v1297_v50 }
 0x9de   : > { %v1333_v52 = vpop.f32.mrf.mxu3 }
 0x9df   : > { %v3275_v53 = vadd.f32 %v1333_v52, %v1315_v0 }
 0x9e1   : > { %1343 = vrot.lane.b32.xlu0 %v3275_v53, %s2789_s10  ;;  %1340 = vrot.lane.b32.xlu2 %v3275_v53, %s2788_s26  ;;  %v1348_v43 = vrot.slane %v3275_v53, 4 }
 0x9e2   : > { %1337 = vrot.lane.b32.xlu1 %v3275_v53, %s2787_s14  ;;  %s2722_s14 = scalar_lea.hbm %s3577_s4, 16 }
 0x9e3   : > { %p2724_p9 = scmp.lt.s32.totalorder %s2722_s14, %s2718_s29 }
 0x9e5   : > { %p2725_p5 = por %p2724_p9, %p2723_p7 }
 0x9e7   : > { %p2726_p8 = pnand %p2725_p5, %p2721_p12 }
 0x9ea   : > { %1456 = vrot.lane.b32.xlu1 %v3275_v53, %s2786_s13 }
 0xa3b   : > { %v3285_v54 = vpop.permute.xlu2 %1340 }
 0xa3c   : > { %1460 = vrot.lane.b32.xlu1 %v3285_v54, %s2786_s13  ;;  %v1349_v1 = vsel %vm380_vm7, %v3285_v54, %v1348_v43  ;;  %v1346_v3 = vrot.slane %v3285_v54, 4 }
 0xa3d   : > { %v1357_v6 = vperm.slane %v1349_v1, %v3012_v62 }
 0xa3e   : > { %v1347_v9 = vsel %vm380_vm7, %v1346_v3, %v3275_v53 }
 0xa3f   : > { %v1384_v11 = vrot.slane %v1357_v6, 4  ;;  %v1353_v13 = vperm.slane %v1347_v9, %v3012_v62 }
 0xa41   : > { %v1372_v17 = vrot.slane %v1353_v13, 4 }
 0xa53   : > { %v3289_v59 = vpop.permute.xlu0 %1343 }
 0xa54   : > { %v3291_v61 = vpop.permute.xlu1 %1337  ;;  %1462 = vrot.lane.b32.xlu0 %v3289_v59, %s2786_s13  ;;  %v1358_v7 = vrot.slane %v3289_v59, 4 }
 0xa55   : > { %1458 = vrot.lane.b32.xlu2 %v3291_v61, %s2786_s13  ;;  %v1360_v63 = vrot.slane %v3291_v61, 4 }
 0xa56   : > { %v1359_v45 = vsel %vm380_vm7, %v1358_v7, %v3291_v61 }
 0xa57   : > { %v1361_v5 = vsel %vm380_vm7, %v3289_v59, %v1360_v63  ;;  %v1365_v8 = vperm.slane %v1359_v45, %v3012_v62 }
 0xa58   : > { %v1369_v10 = vperm.slane %v1361_v5, %v3012_v62 }
 0xa59   : > { %v1373_v19 = vsel %vm380_vm7, %v1365_v8, %v1372_v17  ;;  %v1370_v20 = vrot.slane %v1365_v8, 4 }
 0xa5a   : > { %v1382_v15 = vrot.slane %v1369_v10, 4  ;;  %v1385_v16 = vsel %vm380_vm7, %v1369_v10, %v1384_v11  ;;  %v1381_v25 = vperm.slane %v1373_v19, %v3028_v14 }
 0xa5b   : > { %v1393_v60 = vperm.slane %v1385_v16, %v3028_v14  ;;  %v1371_v27 = vsel %vm380_vm7, %v1370_v20, %v1353_v13 }
 0xa5c   : > { %v1457_v12 = vpop.permute.xlu1 %1456  ;;  %v1383_v18 = vsel %vm380_vm7, %v1382_v15, %v1357_v6  ;;  %v1396_v31 = vrot.slane %v1381_v25, 4  ;;  %v1377_v51 = vperm.slane %v1371_v27, %v3028_v14 }
 0xa5d   : > { %v1389_v22 = vperm.slane %v1383_v18, %v3028_v14  ;;  %v1400_v23 = vrot.slane %v1393_v60, 4  ;;  %v1470_v47 = vrot.slane %v1457_v12, 4 }
 0xa5e   : > { %v1397_v37 = vsel %vm380_vm7, 0.0, %v1396_v31  ;;  %v1394_v41 = vrot.slane %v1377_v51, 4  ;;  %v1402_v5 = vsel %vm380_vm7, %v1396_v31, %v1377_v51 }
 0xa5f   : > { %v1401_v28 = vsel %vm380_vm7, 0.0, %v1400_v23  ;;  %v1398_v30 = vrot.slane %v1389_v22, 4  ;;  %v1413_v36 = vsel %vm380_vm7, %v1400_v23, %v1389_v22  ;;  %v1407_v58 = vrot.slane %v1397_v37, 4 }
 0xa60   : > { %v1418_v33 = vrot.slane %v1401_v28, 4  ;;  %v1417_v55 = vperm.slane %v1413_v36, %v3012_v62  ;;  %v1395_v3 = vsel %vm380_vm7, 0.0, %v1394_v41  ;;  %v1406_v16 = vperm.slane %v1402_v5, %v3012_v62 }
 0xa61   : > { %v1399_v4 = vsel %vm380_vm7, 0.0, %v1398_v30  ;;  %v1408_v8 = vsel %vm380_vm7, %v1407_v58, %v1395_v3 }
 0xa62   : > { %v1419_v56 = vsel %vm380_vm7, %v1418_v33, %v1399_v4  ;;  %v1438_v11 = vrot.slane %v1417_v55, 4  ;;  %v1412_v31 = vperm.slane %v1408_v8, %v3012_v62 }
 0xa63   : > { %v1423_v6 = vperm.slane %v1419_v56, %v3012_v62 }
 0xa65   : > { %v1436_v22 = vrot.slane %v1423_v6, 4  ;;  %v1439_v23 = vsel %vm380_vm7, %v1423_v6, %v1438_v11 }
 0xa66   : > { %v1447_v4 = vperm.slane %v1439_v23, %v3028_v14 }
 0xa67   : > { %v1437_v36 = vsel %vm380_vm7, %v1436_v22, %v1417_v55 }
 0xa68   : > { %v1443_v58 = vperm.slane %v1437_v36, %v3028_v14 }
 0xaae   : > { %v1461_v21 = vpop.permute.xlu1 %1460 }
 0xaaf   : > { %v1468_v26 = vrot.slane %v1461_v21, 4  ;;  %v1471_v29 = vsel %vm380_vm7, %v1461_v21, %v1470_v47  ;;  %v1459_v49 = vpop.permute.xlu2 %1458 }
 0xab0   : > { %v1479_v34 = vperm.slane %v1471_v29, %v3012_v62  ;;  %v1482_v35 = vrot.slane %v1459_v49, 4 }
 0xab1   : > { %v1469_v32 = vsel %vm380_vm7, %v1468_v26, %v1457_v12 }
 0xab2   : > { %v1475_v38 = vperm.slane %v1469_v32, %v3012_v62  ;;  %v1506_v46 = vrot.slane %v1479_v34, 4 }
 0xab4   : > { %v1494_v0 = vrot.slane %v1475_v38, 4 }
 0xac6   : > { %v1463_v39 = vpop.permute.xlu0 %1462 }
 0xac7   : > { %v1480_v42 = vrot.slane %v1463_v39, 4  ;;  %v1483_v44 = vsel %vm380_vm7, %v1463_v39, %v1482_v35  ;;  %v1426_v35 = vrot.slane %v1406_v16, 4 }
 0xac8   : > { %v1491_v48 = vperm.slane %v1483_v44, %v3012_v62  ;;  %v1424_v44 = vrot.slane %v1412_v31, 4 }
 0xac9   : > { %v1481_v50 = vsel %vm380_vm7, %v1480_v42, %v1459_v49 }
 0xaca   : > { %v1487_v52 = vperm.slane %v1481_v50, %v3012_v62  ;;  %v1504_v43 = vrot.slane %v1491_v48, 4  ;;  %v1507_v63 = vsel %vm380_vm7, %v1491_v48, %v1506_v46  ;;  %v1425_v6 = vsel %vm380_vm7, %v1424_v44, %v1406_v16 }
 0xacb   : > { %v1515_v1 = vperm.slane %v1507_v63, %v3028_v14  ;;  %v1452_v63 = vrot.slane %v1447_v4, 4 }
 0xacc   : > { %v1492_v7 = vrot.slane %v1487_v52, 4  ;;  %v1495_v9 = vsel %vm380_vm7, %v1487_v52, %v1494_v0  ;;  %v1505_v10 = vsel %vm380_vm7, %v1504_v43, %v1479_v34  ;;  %v1427_v52 = vsel %vm380_vm7, %v1412_v31, %v1426_v35 }
 0xacd   : > { %v1503_v45 = vperm.slane %v1495_v9, %v3028_v14  ;;  %v1511_v12 = vperm.slane %v1505_v10, %v3028_v14  ;;  %v1522_v13 = vrot.slane %v1515_v1, 4  ;;  %v1448_v9 = vrot.slane %v1443_v58, 4 }
 0xace   : > { %v1493_v15 = vsel %vm380_vm7, %v1492_v7, %v1475_v38  ;;  %v1435_v7 = vperm.slane %v1427_v52, %v3028_v14 }
 0xacf   : > { %v1499_v17 = vperm.slane %v1493_v15, %v3028_v14  ;;  %v1518_v60 = vrot.slane %v1503_v45, 4  ;;  %v1520_v18 = vrot.slane %v1511_v12, 4  ;;  %v1523_v19 = vsel %vm380_vm7, 0.0, %v1522_v13 }
 0xad0   : > { %v1535_v20 = vsel %vm380_vm7, %v1522_v13, %v1511_v12  ;;  %v1540_v21 = vrot.slane %v1523_v19, 4  ;;  %v1453_v12 = vsel %vm380_vm7, %v1452_v63, %v1435_v7  ;;  %v1431_v13 = vperm.slane %v1425_v6, %v3028_v14 }
 0xad1   : > { %v1516_v25 = vrot.slane %v1499_v17, 4  ;;  %v1519_v47 = vsel %vm380_vm7, 0.0, %v1518_v60  ;;  %v1521_v26 = vsel %vm380_vm7, 0.0, %v1520_v18  ;;  %v1539_v27 = vperm.slane %v1535_v20, %v3012_v62 }
 0xad2   : > { %v1529_v28 = vrot.slane %v1519_v47, 4  ;;  %v1524_v29 = vsel %vm380_vm7, %v1518_v60, %v1499_v17  ;;  %v1541_v30 = vsel %vm380_vm7, %v1540_v21, %v1521_v26  ;;  %v1449_v16 = vsel %vm380_vm7, %v1448_v9, %v1431_v13 }
 0xad3   : > { %v1517_v49 = vsel %vm380_vm7, 0.0, %v1516_v25  ;;  %v1528_v51 = vperm.slane %v1524_v29, %v3012_v62  ;;  %v1545_v32 = vperm.slane %v1541_v30, %v3012_v62  ;;  %v1560_v33 = vrot.slane %v1539_v27, 4 }
 0xad4   : > { %v1530_v34 = vsel %vm380_vm7, %v1529_v28, %v1517_v49  ;;  %v1450_v17 = vrot.slane %v1431_v13, 4  ;;  %v1454_v18 = vrot.slane %v1435_v7, 4  ;;  %v2524_v49 = vpack.i.bf16 %v3289_v59, %v3285_v54 }
 0xad5   : > { %v1534_v37 = vperm.slane %v1530_v34, %v3012_v62  ;;  %v1548_v38 = vrot.slane %v1528_v51, 4  ;;  %v1558_v39 = vrot.slane %v1545_v32, 4  ;;  %v1561_v41 = vsel %vm380_vm7, %v1545_v32, %v1560_v33 }
 0xad6   : > { %v1569_v42 = vperm.slane %v1561_v41, %v3028_v14  ;;  %v1451_v60 = vsel %vm380_vm7, %v1443_v58, %v1450_v17  ;;  %v1455_v19 = vsel %vm380_vm7, %v1447_v4, %v1454_v18 }
 0xad7   : > { %v1546_v46 = vrot.slane %v1534_v37, 4  ;;  %v1549_v48 = vsel %vm380_vm7, %v1534_v37, %v1548_v38  ;;  %v1559_v56 = vsel %vm380_vm7, %v1558_v39, %v1539_v27 }
 0xad8   : > { %v1557_v50 = vperm.slane %v1549_v48, %v3028_v14  ;;  %v1574_v0 = vrot.slane %v1569_v42, 4  ;;  %v1565_v55 = vperm.slane %v1559_v56, %v3028_v14 }
 0xad9   : > { %v1547_v43 = vsel %vm380_vm7, %v1546_v46, %v1528_v51  ;;  %v2519_v51 = vpack.i.bf16 %v3291_v61, %v3275_v53 }
 0xada   : > { %v1575_v1 = vsel %vm380_vm7, %v1574_v0, %v1557_v50  ;;  %v1553_v3 = vperm.slane %v1547_v43, %v3028_v14  ;;  %v1570_v5 = vrot.slane %v1565_v55, 4  ;;  %v1576_v10 = vrot.slane %v1557_v50, 4 }
 0xadb   : > { %2411 = vmatpush.xpose.msk.msrb.mxu0 %vm737_vm8, %v1575_v1 }
 0xadc   : > { %v1571_v11 = vsel %vm380_vm7, %v1570_v5, %v1553_v3  ;;  %v1572_v45 = vrot.slane %v1553_v3, 4  ;;  %v1577_v8 = vsel %vm380_vm7, %v1569_v42, %v1576_v10 }
 0xadd   : > { %2407 = vmatpush.xpose.msk.msra.mxu1 %vm737_vm8, %v1571_v11 }
 0xade   : > { %2412 = vmatmul.msk.f32.vlgmr.msrb.gmra.mxu0 %vm737_vm8, %v1453_v12  ;;  %v1573_v15 = vsel %vm380_vm7, %v1565_v55, %v1572_v45 }
 0xae0   : > { %2408 = vmatmul.msk.f32.vlgmr.msra.gmra.mxu1 %vm737_vm8, %v1449_v16 }
 0xae1   : > { %2409 = vmatpush.xpose.msk.msrb.mxu1 %vm737_vm8, %v1573_v15 }
 0xae5   : > { %2413 = vmatpush.xpose.msk.msra.mxu1 %vm737_vm8, %v1577_v8 }
 0xae8   : > { %2410 = vmatmul.msk.f32.vlgmr.msrb.gmra.mxu1 %vm737_vm8, %v1451_v60 }
 0xaf0   : > { %2414 = vmatmul.msk.f32.vlgmr.msra.gmra.mxu1 %vm737_vm8, %v1455_v19 }
 0xb5b   : > { %v1775_v20 = vpop.f32.mrf.mxu0 }
 0xb5c   : > { %v1776_v21 = vadd.f32 %v1775_v20, %v3117_v24 }
 0xb5d   : > { %v1723_v22 = vpop.f32.mrf.mxu1 }
 0xb5e   : > { %v1724_v23 = vadd.f32 %v1723_v22, %v3117_v24  ;;  %v1810_v25 = vsel %vm737_vm8, %v1776_v21, -inf }
 0xb5f   : > { %1811 = vmax.xlane.f32.xlu0 %v1810_v25 }
 0xb60   : > { %v1804_v47 = vsel %vm737_vm8, %v1724_v23, -inf }
 0xb61   : > { %1805 = vmax.xlane.f32.xlu2 %v1804_v47 }
 0xb65   : > { %v1749_v26 = vpop.f32.mrf.mxu1 }
 0xb66   : > { %v1750_v27 = vadd.f32 %v1749_v26, %v3117_v24 }
 0xb68   : > { %v1807_v28 = vsel %vm737_vm8, %v1750_v27, -inf }
 0xb69   : > { %1808 = vmax.xlane.f32.xlu1 %v1807_v28 }
 0xb6d   : > { %v1801_v29 = vpop.f32.mrf.mxu1 }
 0xb6e   : > { %v1802_v30 = vadd.f32 %v1801_v29, %v3117_v24 }
 0xb70   : > { %v1813_v31 = vsel %vm737_vm8, %v1802_v30, -inf }
 0xb71   : > { %1814 = vmax.xlane.f32.xlu2 %v1813_v31 }
 0xb73   : > { %2525 = vrot.lane.b32.xlu0 %v2524_v49, %s2793_s12 }
 0xb82   : > { %2520 = vrot.lane.b32.xlu1 %v2519_v51, %s2793_s12 }
 0xbd2   : > { %v1812_v35 = vpop.xlane.xlu0 %1811 }
 0xbd3   : > { %v1818_v37 = vsub.f32 %v1776_v21, %v1812_v35 }
 0xbd4   : > { %v1806_v32 = vpop.xlane.xlu2 %1805 }
 0xbd5   : > { %v1816_v33 = vsub.f32 %v1724_v23, %v1806_v32  ;;  %v1824_v59 = vmul.f32 1.442695, %v1818_v37 }
 0xbd7   : > { %v1820_v34 = vmul.f32 1.442695, %v1816_v33 }
 0xbd9   : > { %2557 = vpow2.f32 %v1820_v34 }
 0xbdc   : > { %v1809_v4 = vpop.xlane.xlu1 %1808 }
 0xbdd   : > { %v1817_v24 = vsub.f32 %v1750_v27, %v1809_v4 }
 0xbdf   : > { %v3407_v36 = vpop.eup %2557  ;;  %v1822_v38 = vmul.f32 1.442695, %v1817_v24 }
 0xbe0   : > { %v1828_v54 = vsel %vm737_vm8, %v3407_v36, 0.0 }
 0xbe1   : > { %2559 = vpow2.f32 %v1822_v38  ;;  %1829 = vadd.xlane.f32.xlu2 %v1828_v54 }
 0xbe2   : > { %2561 = vpow2.f32 %v1824_v59 }
 0xbe4   : > { %v1815_v53 = vpop.xlane.xlu2 %1814 }
 0xbe5   : > { %v1819_v61 = vsub.f32 %v1802_v30, %v1815_v53  ;;  %v2526_v46 = vpop.permute.xlu0 %2525 }
 0xbe6   : > { %v2528_v50 = vunpack.i.h.bf16 %v2526_v46  ;;  %v2527_v0 = vunpack.i.l.bf16 %v2526_v46 }
 0xbe7   : > { %v3411_v39 = vpop.eup %2559  ;;  %v1826_v41 = vmul.f32 1.442695, %v1819_v61 }
 0xbe8   : > { %v1831_v42 = vsel %vm737_vm8, %v3411_v39, 0.0  ;;  %v3415_v44 = vpop.eup %2561  ;;  %v1602_v52 = vrot.slane %v2528_v50, 4  ;;  %v1590_v43 = vrot.slane %v2527_v0, 4 }
 0xbe9   : > { %2563 = vpow2.f32 %v1826_v41  ;;  %1832 = vadd.xlane.f32.xlu2 %v1831_v42  ;;  %v1834_v56 = vsel %vm737_vm8, %v3415_v44, 0.0 }
 0xbef   : > { %v3417_v48 = vpop.eup %2563 }
 0xbf0   : > { %v1837_v58 = vsel %vm737_vm8, %v3417_v48, 0.0 }
 0xbf1   : > { %1835 = vadd.xlane.f32.xlu2 %v1834_v56  ;;  %1838 = vadd.xlane.f32.xlu0 %v1837_v58 }
 0xbf4   : > { %v2521_v55 = vpop.permute.xlu1 %2520 }
 0xbf5   : > { %v2523_v63 = vunpack.i.h.bf16 %v2521_v55  ;;  %v2522_v1 = vunpack.i.l.bf16 %v2521_v55 }
 0xbf7   : > { %v1603_v3 = vsel %vm380_vm7, %v1602_v52, %v2523_v63  ;;  %v1604_v5 = vrot.slane %v2523_v63, 4  ;;  %v1591_v6 = vsel %vm380_vm7, %v1590_v43, %v2522_v1  ;;  %v1592_v7 = vrot.slane %v2522_v1, 4 }
 0xbf8   : > { %v1609_v9 = vperm.slane %v1603_v3, %v3012_v62  ;;  %v1597_v10 = vperm.slane %v1591_v6, %v3012_v62 }
 0xbf9   : > { %v1605_v11 = vsel %vm380_vm7, %v2528_v50, %v1604_v5  ;;  %v1593_v45 = vsel %vm380_vm7, %v2527_v0, %v1592_v7 }
 0xbfa   : > { %v1613_v12 = vperm.slane %v1605_v11, %v3012_v62  ;;  %v1614_v13 = vrot.slane %v1609_v9, 4  ;;  %v1601_v15 = vperm.slane %v1593_v45, %v3012_v62  ;;  %v1616_v16 = vrot.slane %v1597_v10, 4 }
 0xbfc   : > { %v1626_v8 = vrot.slane %v1613_v12, 4  ;;  %v1615_v17 = vsel %vm380_vm7, %v1614_v13, %v1597_v10  ;;  %v1617_v60 = vsel %vm380_vm7, %v1609_v9, %v1616_v16  ;;  %v1628_v18 = vrot.slane %v1601_v15, 4 }
 0xbfd   : > { %v1621_v19 = vperm.slane %v1615_v17, %v3028_v14  ;;  %v1625_v20 = vperm.slane %v1617_v60, %v3028_v14 }
 0xbfe   : > { %v1627_v21 = vsel %vm380_vm7, %v1626_v8, %v1601_v15  ;;  %v1629_v22 = vsel %vm380_vm7, %v1613_v12, %v1628_v18 }
 0xbff   : > { %v1633_v23 = vperm.slane %v1627_v21, %v3028_v14  ;;  %v1637_v25 = vperm.slane %v1629_v22, %v3028_v14  ;;  %v1638_v47 = vrot.slane %v1621_v19, 4  ;;  %v1640_v26 = vrot.slane %v1625_v20, 4 }
 0xc01   : > { %v1641_v27 = vsel %vm380_vm7, 0.0, %v1640_v26  ;;  %v1642_v28 = vrot.slane %v1633_v23, 4  ;;  %v1644_v29 = vrot.slane %v1637_v25, 4  ;;  %v1646_v30 = vsel %vm380_vm7, %v1640_v26, %v1621_v19 }
 0xc02   : > { %v1651_v31 = vrot.slane %v1641_v27, 4  ;;  %v1639_v49 = vsel %vm380_vm7, 0.0, %v1638_v47  ;;  %v1650_v32 = vperm.slane %v1646_v30, %v3012_v62 }
 0xc03   : > { %v1645_v51 = vsel %vm380_vm7, 0.0, %v1644_v29  ;;  %v1657_v33 = vsel %vm380_vm7, %v1644_v29, %v1633_v23  ;;  %v1643_v24 = vsel %vm380_vm7, 0.0, %v1642_v28 }
 0xc04   : > { %v1662_v34 = vrot.slane %v1645_v51, 4  ;;  %v1652_v35 = vsel %vm380_vm7, %v1651_v31, %v1639_v49  ;;  %v1661_v4 = vperm.slane %v1657_v33, %v3012_v62  ;;  %v1670_v38 = vrot.slane %v1650_v32, 4 }
 0xc05   : > { %v1656_v37 = vperm.slane %v1652_v35, %v3012_v62 }
 0xc06   : > { %v1663_v54 = vsel %vm380_vm7, %v1662_v34, %v1643_v24  ;;  %v1682_v59 = vrot.slane %v1661_v4, 4 }
 0xc07   : > { %v1667_v53 = vperm.slane %v1663_v54, %v3012_v62  ;;  %v1671_v61 = vsel %vm380_vm7, %v1656_v37, %v1670_v38  ;;  %v1668_v41 = vrot.slane %v1656_v37, 4 }
 0xc08   : > { %v1679_v42 = vperm.slane %v1671_v61, %v3028_v14 }
 0xc09   : > { %v1683_v46 = vsel %vm380_vm7, %v1667_v53, %v1682_v59  ;;  %v1669_v56 = vsel %vm380_vm7, %v1668_v41, %v1650_v32  ;;  %v1680_v58 = vrot.slane %v1667_v53, 4 }
 0xc0a   : > { %v1691_v50 = vperm.slane %v1683_v46, %v3028_v14  ;;  %v1698_v0 = vrot.slane %v1679_v42, 4  ;;  %v1675_v55 = vperm.slane %v1669_v56, %v3028_v14 }
 0xc0b   : > { %v1681_v52 = vsel %vm380_vm7, %v1680_v58, %v1661_v4 }
 0xc0c   : > { %v1699_v43 = vsel %vm380_vm7, %v1691_v50, %v1698_v0  ;;  %v1687_v63 = vperm.slane %v1681_v52, %v3028_v14  ;;  %v1694_v1 = vrot.slane %v1675_v55, 4  ;;  %v1696_v3 = vrot.slane %v1691_v50, 4 }
 0xc0d   : > { %1935 = vmatpush.msrb.mxu1 %v1699_v43 }
 0xc0e   : > { %v1695_v5 = vsel %vm380_vm7, %v1687_v63, %v1694_v1  ;;  %v1697_v6 = vsel %vm380_vm7, %v1696_v3, %v1679_v42  ;;  %v1692_v7 = vrot.slane %v1687_v63, 4 }
 0xc0f   : > { %1889 = vmatpush.msrb.mxu3 %v1695_v5  ;;  %1912 = vmatpush.msra.mxu0 %v1697_v6 }
 0xc10   : > { %v1693_v9 = vsel %vm380_vm7, %v1692_v7, %v1675_v55 }
 0xc11   : > { %1866 = vmatpush.msrb.mxu2 %v1693_v9 }
 0xc54   : > { %v1830_v10 = vpop.xlane.xlu2 %1829 }
 0xc55   : > { %2565 = vrcp.f32 %v1830_v10 }
 0xc5b   : > { %v2566_v11 = vpop.eup %2565 }
 0xc5c   : > { %v1844_v45 = vmul.f32 %v2566_v11, %v3407_v36  ;;  %v1833_v12 = vpop.xlane.xlu2 %1832 }
 0xc5d   : > { %2567 = vrcp.f32 %v1833_v12 }
 0xc5e   : > { %2415 = vmatmul.msk.f32.vlgmr.msrb.gmra.mxu2 %vm737_vm8, %v1844_v45 }
 0xc63   : > { %v2568_v13 = vpop.eup %2567 }
 0xc64   : > { %v1845_v15 = vmul.f32 %v2568_v13, %v3411_v39  ;;  %v1839_v16 = vpop.xlane.xlu0 %1838  ;;  %v1836_v8 = vpop.xlane.xlu2 %1835 }
 0xc65   : > { %2569 = vrcp.f32 %v1839_v16 }
 0xc66   : > { %2571 = vrcp.f32 %v1836_v8  ;;  %2416 = vmatmul.msk.f32.vlgmr.msrb.gmra.mxu3 %vm737_vm8, %v1845_v15 }
 0xc6b   : > { %v2570_v17 = vpop.eup %2569 }
 0xc6c   : > { %v2572_v60 = vpop.eup %2571  ;;  %v1847_v18 = vmul.f32 %v2570_v17, %v3417_v48 }
 0xc6d   : > { %v1846_v19 = vmul.f32 %v2572_v60, %v3415_v44 }
 0xc6e   : > { %2418 = vmatmul.msk.f32.vlgmr.msrb.gmra.mxu1 %vm737_vm8, %v1847_v18 }
 0xc6f   : > { %2417 = vmatmul.msk.f32.vlgmr.msra.gmra.mxu0 %vm737_vm8, %v1846_v19 }
 0xce1   : > { %v1868_v36 = vpop.f32.mrf.mxu2 }
 0xce2   : > { %v1942_v39 = vrot.slane %v1868_v36, 4 }
 0xce9   : > { %v1891_v20 = vpop.f32.mrf.mxu3 }
 0xcea   : > { %v1954_v21 = vrot.slane %v1891_v20, 4 }
 0xceb   : > { %v1937_v22 = vpop.f32.mrf.mxu1 }
 0xcec   : > { %v1914_v23 = vpop.f32.mrf.mxu0  ;;  %v1952_v25 = vrot.slane %v1937_v22, 4  ;;  %v1955_v47 = vsel %vm380_vm7, %v1937_v22, %v1954_v21 }
 0xced   : > { %v1940_v26 = vrot.slane %v1914_v23, 4  ;;  %v1943_v27 = vsel %vm380_vm7, %v1914_v23, %v1942_v39  ;;  %v1963_v48 = vperm.slane %v1955_v47, %v3012_v62  ;;  %v2068_v47 = vld [vmem:[#allocation7 + $0x290] sm:$0xff] }
 0xcee   : > { %v1951_v44 = vperm.slane %v1943_v27, %v3012_v62  ;;  %v1953_v28 = vsel %vm380_vm7, %v1952_v25, %v1891_v20  ;;  %v2069_v25 = vld [vmem:[#allocation7 + $0x298] sm:$0xff] }
 0xcef   : > { %v1941_v29 = vsel %vm380_vm7, %v1940_v26, %v1868_v36  ;;  %v1959_v30 = vperm.slane %v1953_v28, %v3012_v62  ;;  %v1976_v31 = vrot.slane %v1963_v48, 4  ;;  %2086 = vmatpush.msra.mxu2 %v2069_v25  ;;  %v2067_v26 = vld [vmem:[#allocation7 + $0x288] sm:$0xff] }
 0xcf0   : > { %v1947_v49 = vperm.slane %v1941_v29, %v3012_v62  ;;  %v1978_v51 = vrot.slane %v1951_v44, 4 }
 0xcf1   : > { %v1964_v32 = vrot.slane %v1959_v30, 4  ;;  %v1977_v33 = vsel %vm380_vm7, %v1976_v31, %v1951_v44  ;;  %2087 = vmatpush.msra.mxu2 %v2068_v47  ;;  %v2070_v31 = vperm.slane %v3269_v40, 5 }
 0xcf2   : > { %v1966_v34 = vrot.slane %v1947_v49, 4  ;;  %v1979_v35 = vsel %vm380_vm7, %v1963_v48, %v1978_v51  ;;  %v1983_v4 = vperm.slane %v1977_v33, %v3028_v14 }
 0xcf3   : > { %v1965_v24 = vsel %vm380_vm7, %v1964_v32, %v1947_v49  ;;  %v1987_v37 = vperm.slane %v1979_v35, %v3028_v14  ;;  %2088 = vmatpush.msra.mxu2 %v2067_v26 }
 0xcf4   : > { %v1967_v38 = vsel %vm380_vm7, %v1959_v30, %v1966_v34  ;;  %v1971_v54 = vperm.slane %v1965_v24, %v3028_v14  ;;  %v1992_v53 = vrot.slane %v1983_v4, 4 }
 0xcf5   : > { %v1975_v59 = vperm.slane %v1967_v38, %v3028_v14  ;;  %v1994_v61 = vrot.slane %v1987_v37, 4  ;;  %v2152_v37 = vld [vmem:[#allocation7 + $0x378] sm:$0xff]  ;;  %v2151_v38 = vld [vmem:[#allocation7 + $0x370] sm:$0xff] }
 0xcf6   : > { %v1988_v41 = vrot.slane %v1971_v54, 4  ;;  %v1993_v55 = vsel %vm380_vm7, 0.0, %v1992_v53  ;;  %2154 = vmatpush.msra.mxu3 %v2152_v37  ;;  %v2147_v53 = vld [vmem:[#allocation7 + $0x350] sm:$0xff]  ;;  %v2153_v37 = vperm.slane %v3269_v40, 6 }
 0xcf7   : > { %v1990_v42 = vrot.slane %v1975_v59, 4  ;;  %v1995_v46 = vsel %vm380_vm7, 0.0, %v1994_v61  ;;  %v2007_v56 = vsel %vm380_vm7, %v1994_v61, %v1983_v4  ;;  %v2148_v59 = vld [vmem:[#allocation7 + $0x358] sm:$0xff]  ;;  %v2146_v61 = vld [vmem:[#allocation7 + $0x348] sm:$0xff] }
 0xcf8   : > { %v2011_v58 = vperm.slane %v2007_v56, %v3012_v62  ;;  %v2012_v50 = vrot.slane %v1995_v46, 4  ;;  %v1989_v5 = vsel %vm380_vm7, 0.0, %v1988_v41  ;;  %2155 = vmatpush.msra.mxu3 %v2151_v38  ;;  %v2145_v41 = vld [vmem:[#allocation7 + $0x340] sm:$0xff]  ;;  %v2144_v46 = vld [vmem:[#allocation7 + $0x338] sm:$0xff] }
 0xcf9   : > { %v1991_v0 = vsel %vm380_vm7, 0.0, %v1990_v42  ;;  %v1996_v52 = vsel %vm380_vm7, %v1990_v42, %v1971_v54  ;;  %v2149_v54 = vld [vmem:[#allocation7 + $0x360] sm:$0xff] }
 0xcfa   : > { %v2001_v43 = vrot.slane %v1991_v0, 4  ;;  %v2000_v63 = vperm.slane %v1996_v52, %v3012_v62  ;;  %v2013_v1 = vsel %vm380_vm7, %v2012_v50, %v1993_v55  ;;  %v2032_v3 = vrot.slane %v2011_v58, 4  ;;  %v2142_v50 = vld [vmem:[#allocation7 + $0x328] sm:$0xff]  ;;  %v2141_v0 = vld [vmem:[#allocation7 + $0x320] sm:$0xff]  ;;  %v2140_v55 = vld [vmem:[#allocation7 + $0x318] sm:$0xff] }
 0xcfb   : > { %v2017_v6 = vperm.slane %v2013_v1, %v3012_v62 }
 0xcfc   : > { %v2002_v7 = vsel %vm380_vm7, %v2001_v43, %v1989_v5  ;;  %v2020_v9 = vrot.slane %v2000_v63, 4 }
 0xcfd   : > { %v2006_v10 = vperm.slane %v2002_v7, %v3012_v62  ;;  %v2033_v11 = vsel %vm380_vm7, %v2017_v6, %v2032_v3  ;;  %v2030_v45 = vrot.slane %v2017_v6, 4  ;;  %v2138_v3 = vld [vmem:[#allocation7 + $0x308] sm:$0xff]  ;;  %v2137_v6 = vld [vmem:[#allocation7 + $0x300] sm:$0xff] }
 0xcfe   : > { %v2041_v12 = vperm.slane %v2033_v11, %v3028_v14 }
 0xcff   : > { %v2021_v13 = vsel %vm380_vm7, %v2006_v10, %v2020_v9  ;;  %v2018_v15 = vrot.slane %v2006_v10, 4  ;;  %v2031_v16 = vsel %vm380_vm7, %v2030_v45, %v2011_v58  ;;  %v2143_v58 = vld [vmem:[#allocation7 + $0x330] sm:$0xff]  ;;  %v2191_v9 = vld [vmem:[#allocation7 + $0x3f8] sm:$0xff]  ;;  %v2189_v45 = vld [vmem:[#allocation7 + $0x3e8] sm:$0xff] }
 0xd00   : > { %v2029_v8 = vperm.slane %v2021_v13, %v3028_v14  ;;  %v2046_v17 = vrot.slane %v2041_v12, 4  ;;  %v2037_v60 = vperm.slane %v2031_v16, %v3028_v14  ;;  %v2190_v10 = vld [vmem:[#allocation7 + $0x3f0] sm:$0xff]  ;;  %2193 = vmatpush.msrb.mxu0 %v2191_v9 }
 0xd01   : > { %v2019_v18 = vsel %vm380_vm7, %v2018_v15, %v2000_v63  ;;  %v2139_v63 = vld [vmem:[#allocation7 + $0x310] sm:$0xff]  ;;  %v2188_v15 = vld [vmem:[#allocation7 + $0x3e0] sm:$0xff] }
 0xd02   : > { %v2047_v19 = vsel %vm380_vm7, %v2046_v17, %v2029_v8  ;;  %v2025_v62 = vperm.slane %v2019_v18, %v3028_v14  ;;  %v2042_v36 = vrot.slane %v2037_v60, 4  ;;  %v2048_v22 = vrot.slane %v2029_v8, 4  ;;  %v2066_v14 = vld [vmem:[#allocation7 + $0x280] sm:$0xff]  ;;  %2194 = vmatpush.msrb.mxu0 %v2190_v10  ;;  %v2187_v17 = vld [vmem:[#allocation7 + $0x3d8] sm:$0xff]  ;;  %v2186_v18 = vld [vmem:[#allocation7 + $0x3d0] sm:$0xff] }
 0xd03   : > { %2055 = vrot.lane.b32.xlu2 %v2047_v19, %s2794_s7  ;;  %2089 = vmatpush.msra.mxu2 %v2066_v14  ;;  %v2185_v19 = vld [vmem:[#allocation7 + $0x3c8] sm:$0xff]  ;;  %v2180_v14 = vld [vmem:[#allocation7 + $0x3a0] sm:$0xff] }
 0xd04   : > { %v2044_v20 = vrot.slane %v2025_v62, 4  ;;  %v2043_v21 = vsel %vm380_vm7, %v2042_v36, %v2025_v62  ;;  %v2049_v23 = vsel %vm380_vm7, %v2041_v12, %v2048_v22  ;;  %2195 = vmatpush.msrb.mxu0 %v2189_v45  ;;  %v2184_v62 = vld [vmem:[#allocation7 + $0x3c0] sm:$0xff]  ;;  %v2183_v36 = vld [vmem:[#allocation7 + $0x3b8] sm:$0xff] }
 0xd06   : > { %v2045_v39 = vsel %vm380_vm7, %v2037_v60, %v2044_v20  ;;  %2196 = vmatpush.msrb.mxu0 %v2188_v15 }
 0xd07   : > { %2051 = vrot.lane.b32.xlu1 %v2045_v39, %s2795_s9  ;;  %v2182_v39 = vld [vmem:[#allocation7 + $0x3b0] sm:$0xff] }
 0xd08   : > { %2197 = vmatpush.msrb.mxu0 %v2187_v17 }
 0xd0a   : > { %2198 = vmatpush.msrb.mxu0 %v2186_v18 }
 0xd0c   : > { %2199 = vmatpush.msrb.mxu0 %v2185_v19 }
 0xd0e   : > { %2200 = vmatpush.msrb.mxu0 %v2184_v62 }
 0xd0f   : > { %2059 = vrot.lane.b32.xlu1 %v2049_v23, %s2796_s21  ;;  %v2181_v23 = vld [vmem:[#allocation7 + $0x3a8] sm:$0xff] }
 0xd10   : > { %2201 = vmatpush.msrb.mxu0 %v2183_v36 }
 0xd12   : > { %2202 = vmatpush.msrb.mxu0 %v2182_v39 }
 0xd14   : > { %2203 = vmatpush.msrb.mxu0 %v2181_v23 }
 0xd16   : > { %2204 = vmatpush.msrb.mxu0 %v2180_v14 }
 0xd5d   : > { %v2056_v44 = vpop.permute.xlu2 %2055 }
 0xd79   : > { %v2052_v27 = vpop.permute.xlu1 %2051 }
 0xd7a   : > { %v2062_v48 = vsel %vm737_vm8, %v2043_v21, %v2052_v27 }
 0xd7b   : > { %v2063_v29 = vsel %vm1101_vm10, %v2062_v48, %v2056_v44  ;;  %v2179_v48 = vld [vmem:[#allocation7 + $0x398] sm:$0xff] }
 0xd7c   : > { %2205 = vmatpush.msrb.mxu0 %v2179_v48 }
 0xd81   : > { %v2060_v28 = vpop.permute.xlu1 %2059 }
 0xd82   : > { %v2064_v30 = vsel %vm1103_vm11, %v2063_v29, %v2060_v28  ;;  %v2132_v29 = vperm.slane %v3269_v40, 2 }
 0xd83   : > { %2419 = vmatmul.msk.f32.vlgmr.msra.gmra.mxu2 %vm1111_vm12, %v2064_v30 }
 0xe06   : > { %v2091_v49 = vpop.f32.mrf.mxu2 }
 0xe07   : > { %v2092_v51 = vadd.f32 %v2091_v49, %v2070_v31  ;;  %v2134_v49 = vperm.slane %v3269_v40, 3 }
 0xe09   : > { %v3520_v32 = vadd.f32 %v2092_v51, %v3259_v57  ;;  %v2150_v57 = vld [vmem:[#allocation7 + $0x368] sm:$0xff] }
 0xe0a   : > { %2156 = vmatpush.msra.mxu3 %v2150_v57 }
 0xe0b   : > { %2095 = vadd.xlane.f32.xlu1 %v3520_v32 }
 0xe0c   : > { %2157 = vmatpush.msra.mxu3 %v2149_v54 }
 0xe0e   : > { %2158 = vmatpush.msra.mxu3 %v2148_v59  ;;  %v2192_v59 = vperm.slane %v3269_v40, 7 }
 0xe10   : > { %2159 = vmatpush.msra.mxu3 %v2147_v53 }
 0xe12   : > { %2160 = vmatpush.msra.mxu3 %v2146_v61 }
 0xe14   : > { %2161 = vmatpush.msra.mxu3 %v2145_v41 }
 0xe16   : > { %2162 = vmatpush.msra.mxu3 %v2144_v46 }
 0xe18   : > { %2163 = vmatpush.msra.mxu3 %v2143_v58 }
 0xe1a   : > { %2164 = vmatpush.msra.mxu3 %v2142_v50 }
 0xe1c   : > { %2165 = vmatpush.msra.mxu3 %v2141_v0 }
 0xe1e   : > { %2166 = vmatpush.msra.mxu3 %v2140_v55 }
 0xe20   : > { %2167 = vmatpush.msra.mxu3 %v2139_v63 }
 0xe22   : > { %2168 = vmatpush.msra.mxu3 %v2138_v3 }
 0xe24   : > { %2169 = vmatpush.msra.mxu3 %v2137_v6 }
 0xe7e   : > { %v2096_v33 = vpop.xlane.xlu1 %2095 }
 0xe7f   : > { %v2097_v34 = vmul.f32 0.03125, %v2096_v33 }
 0xe81   : > { %v2098_v35 = vsub.f32 %v3520_v32, %v2097_v34  ;;  %v2178_v34 = vld [vmem:[#allocation7 + $0x390] sm:$0xff] }
 0xe82   : > { %2206 = vmatpush.msrb.mxu0 %v2178_v34 }
 0xe83   : > { %v3526_v4 = vsel %vm289_vm0, %v2098_v35, 0.0  ;;  %v2177_v35 = vld [vmem:[#allocation7 + $0x388] sm:$0xff] }
 0xe84   : > { %v2100_v24 = vmul.f32 %v3526_v4, %v3526_v4  ;;  %2207 = vmatpush.msrb.mxu0 %v2177_v35 }
 0xe86   : > { %2101 = vadd.xlane.f32.xlu2 %v2100_v24  ;;  %v2176_v24 = vld [vmem:[#allocation7 + $0x380] sm:$0xff] }
 0xe87   : > { %2208 = vmatpush.msrb.mxu0 %v2176_v24 }
 0xef9   : > { %v2102_v42 = vpop.xlane.xlu2 %2101 }
 0xefa   : > { %v2103_v56 = vmul.f32 0.032258064, %v2102_v42 }
 0xefc   : > { %2573 = vrsqrt.f32 %v2103_v56  ;;  %vm2111_vm7 = vcmp.eq.f32.partialorder %v2103_v56, inf  ;;  %v2114_v13 = vand.u32 2147483648, %v2103_v56  ;;  %vm2113_vm8 = vcmp.eq.f32.partialorder %v2103_v56, 0.0 }
 0xf02   : > { %v2574_v52 = vpop.eup %2573 }
 0xf03   : > { %v2105_v43 = vmul.f32 %v2574_v52, %v2103_v56 }
 0xf05   : > { %v2106_v1 = vmul.f32 %v2574_v52, %v2105_v43 }
 0xf07   : > { %v2107_v5 = vmul.f32 0.5, %v2106_v1 }
 0xf09   : > { %v2108_v7 = vsub.f32 1.5, %v2107_v5 }
 0xf0b   : > { %v2109_v11 = vmul.f32 %v2574_v52, %v2108_v7 }
 0xf0d   : > { %v2110_v12 = vmul.f32 %v2109_v11, %v2103_v56 }
 0xf0f   : > { %v2112_v16 = vsel %vm2111_vm7, %v2103_v56, %v2110_v12 }
 0xf10   : > { %v2115_v8 = vsel %vm2113_vm8, %v2114_v13, %v2112_v16  ;;  %v2215_v13 = vld [vmem:[#allocation8 + $0x10] sm:$0xff] }
 0xf11   : > { %v2116_v60 = vadd.f32 1e-06, %v2115_v8  ;;  %v2253_v17 = vperm.slane %v2215_v13, 0  ;;  %v2255_v19 = vperm.slane %v2215_v13, 1 }
 0xf13   : > { %2575 = vrcp.f32 %v2116_v60  ;;  %v2128_v25 = vand.u32 2147483648, %v2116_v60  ;;  %v2126_v26 = vand.u32 2147483647, %v2116_v60  ;;  %vm2122_vm11 = vweird.f32 %v2116_v60 }
 0xf15   : > { %v2129_v44 = vor.u32 1.1754944e-38, %v2128_v25  ;;  %vm2127_vm15 = vcmp.eq.f32.partialorder %v2126_v26, 8.507059e+37 }
 0xf19   : > { %v2576_v20 = vpop.eup %2575 }
 0xf1a   : > { %v2118_v21 = vmul.f32 %v2576_v20, %v2116_v60  ;;  %vm2123_vm10 = vweird.f32 %v2576_v20 }
 0xf1b   : > { %vm2124_vm12 = vmor %vm2122_vm11, %vm2123_vm10 }
 0xf1c   : > { %v2119_v22 = vsub.f32 1.0, %v2118_v21 }
 0xf1e   : > { %v2120_v47 = vmul.f32 %v2576_v20, %v2119_v22 }
 0xf20   : > { %v2121_v27 = vadd.f32 %v2576_v20, %v2120_v47 }
 0xf22   : > { %v2125_v28 = vsel %vm2124_vm12, %v2576_v20, %v2121_v27 }
 0xf23   : > { %v2130_v30 = vsel %vm2127_vm15, %v2129_v44, %v2125_v28 }
 0xf24   : > { %v2131_v31 = vmul.f32 %v2130_v30, %v3526_v4 }
 0xf26   : > { %v2133_v51 = vmul.f32 %v2132_v29, %v2131_v31 }
 0xf28   : > { %v2135_v33 = vadd.f32 %v2134_v49, %v2133_v51 }
 0xf2a   : > { %2170 = vmatmul.f32.vlgmr.msra.gmra.mxu3 %v2135_v33 }
 0xfad   : > { %v2171_v38 = vpop.f32.mrf.mxu3 }
 0xfae   : > { %v2172_v57 = vadd.f32 %v2171_v38, %v2153_v37 }
 0xfb0   : > { %v2174_v54 = vmax.f32 %v2172_v57, 0.0 }
 0xfb2   : > { %2209 = vmatmul.f32.vlgmr.msrb.gmra.mxu0 %v2174_v54 }
0x102f   : > { %v2210_v4 = vpop.f32.mrf.mxu0 }
0x1030   : > { %v2211_v53 = vadd.f32 %v2210_v4, %v2192_v59 }
0x1032   : > { %v2213_v61 = vadd.f32 %v2211_v53, %v3520_v32 }
0x1034   : > { %2216 = vadd.xlane.f32.xlu0 %v2213_v61 }
0x10a7   : > { %v2217_v41 = vpop.xlane.xlu0 %2216 }
0x10a8   : > { %v2218_v42 = vmul.f32 0.03125, %v2217_v41 }
0x10aa   : > { %v2219_v46 = vsub.f32 %v2213_v61, %v2218_v42 }
0x10ac   : > { %v2220_v56 = vsel %vm289_vm0, %v2219_v46, 0.0 }
0x10ad   : > { %v2221_v58 = vmul.f32 %v2220_v56, %v2220_v56 }
0x10af   : > { %2222 = vadd.xlane.f32.xlu0 %v2221_v58 }
0x1122   : > { %v2223_v50 = vpop.xlane.xlu0 %2222 }
0x1123   : > { %v2224_v0 = vmul.f32 0.032258064, %v2223_v50 }
0x1125   : > { %2577 = vrsqrt.f32 %v2224_v0  ;;  %vm2232_vm1 = vcmp.eq.f32.partialorder %v2224_v0, inf  ;;  %v2235_v32 = vand.u32 2147483648, %v2224_v0  ;;  %vm2234_vm2 = vcmp.eq.f32.partialorder %v2224_v0, 0.0 }
0x112b   : > { %v2578_v55 = vpop.eup %2577 }
0x112c   : > { %v2226_v52 = vmul.f32 %v2578_v55, %v2224_v0 }
0x112e   : > { %v2227_v43 = vmul.f32 %v2578_v55, %v2226_v52 }
0x1130   : > { %v2228_v40 = vmul.f32 0.5, %v2227_v43 }
0x1132   : > { %v2229_v63 = vsub.f32 1.5, %v2228_v40 }
0x1134   : > { %v2230_v1 = vmul.f32 %v2578_v55, %v2229_v63 }
0x1136   : > { %v2231_v3 = vmul.f32 %v2230_v1, %v2224_v0 }
0x1138   : > { %v2233_v5 = vsel %vm2232_vm1, %v2224_v0, %v2231_v3 }
0x1139   : > { %v2236_v6 = vsel %vm2234_vm2, %v2235_v32, %v2233_v5 }
0x113a   : > { %v2237_v2 = vadd.f32 1e-06, %v2236_v6 }
0x113c   : > { %2579 = vrcp.f32 %v2237_v2  ;;  %v2249_v11 = vand.u32 2147483648, %v2237_v2  ;;  %v2247_v12 = vand.u32 2147483647, %v2237_v2  ;;  %vm2243_vm3 = vweird.f32 %v2237_v2 }
0x113e   : > { %v2250_v16 = vor.u32 1.1754944e-38, %v2249_v11  ;;  %vm2248_vm5 = vcmp.eq.f32.partialorder %v2247_v12, 8.507059e+37 }
0x1142   : > { %v2580_v7 = vpop.eup %2579 }
0x1143   : > { %v2239_v9 = vmul.f32 %v2580_v7, %v2237_v2  ;;  %vm2244_vm0 = vweird.f32 %v2580_v7 }
0x1144   : > { %vm2245_vm4 = vmor %vm2243_vm3, %vm2244_vm0 }
0x1145   : > { %v2240_v10 = vsub.f32 1.0, %v2239_v9 }
0x1147   : > { %v2241_v45 = vmul.f32 %v2580_v7, %v2240_v10 }
0x1149   : > { %v2242_v15 = vadd.f32 %v2580_v7, %v2241_v45 }
0x114b   : > { %v2246_v8 = vsel %vm2245_vm4, %v2580_v7, %v2242_v15 }
0x114c   : > { %v2251_v60 = vsel %vm2248_vm5, %v2250_v16, %v2246_v8 }
0x114d   : > { %v2252_v18 = vmul.f32 %v2251_v60, %v2220_v56 }
0x114f   : > { %v2254_v62 = vmul.f32 %v2253_v17, %v2252_v18 }
0x1151   : > { %v2256_v36 = vadd.f32 %v2255_v19, %v2254_v62 }
0x1153   : > { %2257 = vst [vmem:[%s282_s24] sm:$0xff] %v2256_v36 }
0x1154   : > { %2729 = shalt.err (!%p2726_p8)
}
0x1155   : > { %2436 = dma.vmem_to_hbm [thread:$0]  (%p2893_p4), %s2272_s30, 128, %s2274_s22, %s2259_s5  }
0x1156 PF: > { %s2285_s3 = sand.u32 1, %s2768_s15   ;;  %p3589_p10 = scmp.ge.s32.totalorder %s2780_s18, 2 }
0x1157   : > { %s2286_s10 = scalar_lea.sflag [#allocation4], %s2285_s3 }
0x1158   : > { %p2453_p13 = pnand %p3589_p10, %p2897_p6 }
0x115a   : > { %p2454_p11 = pneg %p2453_p13 }
0x115c   : > { %2763 = dma.done.wait (%p2454_p11), %s2286_s10, 128  }
0x115d   : > { %2765 = vsyncadd (%p2454_p11), %s2286_s10, 4294967168  ;;  %s3590_s12 = sld [smem:[#allocation16_spill]]  ;;  %p21_p0 = scmp.ge.s32.totalorder %s2865_s8, 4  }
0x115e   : > { %s3591_s15 = smov %s2772_s16  ;;  %s3592_s16 = smov %s2776_s17 }
0x115f   : > { %s3594_s18 = smov %s2865_s8  ;;  %23 = sbr.rel (!%p21_p0) target bundleno = 11 (0xb), region = 111 }
0x1163   : > { %s3593_s17 = smov %s3590_s12 }
0x1164   :  { %2292 = vsyncpa [#allocation3], 1 }
0x1165   :  { %2294 = vsyncpa [#allocation3 + $0x1], 1 }
0x1166   :  { %2295 = vsyncpa [#allocation6], 1 }
0x1167   :  { %2297 = vsyncpa [#allocation6 + $0x1], 1 }
0x1168   :  { %2298 = vsyncpa [#allocation9], 1 }
0x1169   :  { %2299 = vsyncpa [#allocation4], 1 }
0x116a   :  { %2301 = vsyncpa [#allocation4 + $0x1], 1 }

</bundles_post_ra>
